<compile_context>
chip_gen: v6e
topology: v6e:2x2x1
jax: 0.10.0
libtpu: 0.0.40
codegen_flags: <defaults>
</compile_context>

<pallas_src>
import jax
import jax.numpy as jnp
from jax.experimental import pallas as pl
from jax.experimental.pallas import tpu as pltpu

# ----------------------------- configuration -------------------------------
B = 2                 # batch
ENCODER_DIM = 32      # encoder_dim
HIDDEN = 32           # hidden_size (fc1 output, LSTM layer-0 input size)
OUTPUT = 16           # output_size (LSTM hidden size)
T_INPUT = 8           # t_input_size (sequence length after repeat)
NUM_LAYERS = 2        # num_layers (kernel specialized to 2 layers)
DIM_LAYER = 32        # dim_layer (fc2 output; folded into the head)
NUM_COMPONENTS = 4    # GMM mixture components
OUT_UNITS = 2         # GMM output units per component (x, y stroke)

F32 = jnp.float32
BF16 = jnp.bfloat16

NC2 = NUM_COMPONENTS * OUT_UNITS          # 8
HEAD_W = 2 * NC2 + NUM_COMPONENTS         # 20  (mu | log-sigma | pi columns)
GATES = 4 * OUTPUT                        # 64

# ---- packed bf16 weight buffer layout (row offsets; multiples of 16) -------
FC1_R = 0                                  # (ENCODER_DIM, HIDDEN)
WIH0_R = FC1_R + ENCODER_DIM               # (HIDDEN, 4*OUTPUT)
WHH_R = WIH0_R + HIDDEN                    # (2*OUTPUT, 128) blockdiag(whh0,whh1)
WIH1_R = WHH_R + 2 * OUTPUT                # (OUTPUT, 4*OUTPUT)
COMB_R = WIH1_R + OUTPUT                   # (T*OUTPUT, HEAD_W) fc2 @ head fold
WROWS = COMB_R + T_INPUT * OUTPUT          # 240

# ---- packed f32 buffer layout (constants rows + per-call data rows) --------
FC1B_R = 0
B0_R = 8
B1_R = 16
COMBB_R = 24
DATA_R = 32                                # per-call (B,128) data rows start
FROWS = DATA_R                             # constant rows only

# ---- per-call data lane layout ----------------------------------------------
X_OFF = 0
H_OFF = ENCODER_DIM                        # 32  [h_l0 | h_l1] (2*OUTPUT lanes)
C_OFF = H_OFF + 2 * OUTPUT                 # 64  [c_l0 | c_l1]
DPAD = 128 - (ENCODER_DIM + 4 * OUTPUT)    # 32

# ---- packed output lane layout ----------------------------------------------
OUT_STROKES = 0
OUT_MU = OUT_UNITS
OUT_SIGMA = OUT_MU + NC2
OUT_PI = OUT_SIGMA + NC2
OUT_W = OUT_PI + NUM_COMPONENTS            # 22
OUT_PAD = 128 - OUT_W                      # 106


# ------------------------------- kernel ------------------------------------
def decoder_kernel(w_ref, f_ref, out_ref):
    O = OUTPUT

    # ---- unpack bf16 weights (tile-aligned sublane views) ----
    fc1_wt = w_ref[FC1_R:FC1_R + ENCODER_DIM, 0:HIDDEN]
    wih0_t = w_ref[WIH0_R:WIH0_R + HIDDEN, 0:GATES]
    whh_bd = w_ref[WHH_R:WHH_R + 2 * O, :]              # (2*O, 128) block-diag
    wih1_t = w_ref[WIH1_R:WIH1_R + O, 0:GATES]
    comb_wt = w_ref[COMB_R:COMB_R + T_INPUT * O, 0:HEAD_W]   # (128, 20)

    # ---- unpack f32 biases ----
    fc1_b = f_ref[FC1B_R:FC1B_R + 1, 0:HIDDEN]
    b0 = f_ref[B0_R:B0_R + 1, 0:GATES]
    b1 = f_ref[B1_R:B1_R + 1, 0:GATES]
    comb_b = f_ref[COMBB_R:COMBB_R + 1, 0:HEAD_W]

    # ---- unpack per-call data (one f32 load, lane slices) ----
    d = f_ref[DATA_R:DATA_R + B, :]                      # (B, 128)
    x = d[:, X_OFF:X_OFF + ENCODER_DIM]
    h_cat = d[:, H_OFF:H_OFF + 2 * O]                    # [h_l0 | h_l1]
    c_l0 = d[:, C_OFF:C_OFF + O]
    c_l1 = d[:, C_OFF + O:C_OFF + 2 * O]

    # ---- fc1 + ReLU (dropout is identity in eval mode) ----
    dec = jnp.maximum(
        jnp.dot(x.astype(BF16), fc1_wt, preferred_element_type=F32) + fc1_b,
        0.0)                                             # (B, HIDDEN) f32

    # hoisted, loop-invariant layer-0 input projection (+ combined bias)
    dec_proj = jnp.dot(dec.astype(BF16), wih0_t,
                       preferred_element_type=F32) + b0  # (B, 4*O)

    def lstm_cell(gates, c):
        # PyTorch gate order (i, f, g, o); 2 full-width EUP passes + 1 tanh
        sig = jax.nn.sigmoid(gates)                      # (B, 4*O)
        th = jnp.tanh(gates)                             # (B, 4*O)
        i = sig[:, 0 * O:1 * O]
        f = sig[:, 1 * O:2 * O]
        g = th[:, 2 * O:3 * O]
        o = sig[:, 3 * O:4 * O]
        c_new = f * c + i * g
        h_new = o * jnp.tanh(c_new)
        return h_new, c_new

    # statically unrolled 8-step, 2-layer recurrence; every timestep sees the
    # same (repeated) encoding, so only hidden projections stay in-loop.
    h1_hist = []
    for t in range(T_INPUT):
        # one full-128-lane MXU push projects BOTH layers' previous hidden
        # states: hh[:, :64] = h_l0 @ whh0, hh[:, 64:] = h_l1 @ whh1.
        hh = jnp.dot(h_cat.astype(BF16), whh_bd,
                     preferred_element_type=F32)         # (B, 128)

        # layer 0
        g0 = dec_proj + hh[:, 0:GATES]
        h_l0, c_l0 = lstm_cell(g0, c_l0)

        # layer 1 (recurrent term already in hh; only K=16 matmul in-chain)
        g1 = hh[:, GATES:2 * GATES] + b1 + jnp.dot(
            h_l0.astype(BF16), wih1_t, preferred_element_type=F32)
        h_l1, c_l1 = lstm_cell(g1, c_l1)

        h1_hist.append(h_l1)
        if t + 1 < T_INPUT:
            h_cat = jnp.concatenate([h_l0, h_l1], axis=-1)

    # ---- flatten LSTM outputs; folded fc2+GMM head: one (B,128)@(128,20) ---
    h_flat = jnp.concatenate(h1_hist, axis=-1).astype(BF16)      # (B, T*O)
    head = jnp.dot(h_flat, comb_wt,
                   preferred_element_type=F32) + comb_b          # (B, 20)

    mu = head[:, 0:NC2]                                  # (B, NC*2)
    sigma = jnp.exp(head[:, NC2:2 * NC2])                # (B, NC*2)
    logits = head[:, 2 * NC2:2 * NC2 + NUM_COMPONENTS]   # (B, NC)
    z = logits - jnp.max(logits, axis=-1, keepdims=True)
    ez = jnp.exp(z)
    pi = ez * pl.reciprocal(jnp.sum(ez, axis=-1, keepdims=True), approx=True)

    # greedy sample: mean of the max-probability component; ties resolved to
    # the FIRST max component (argmax semantics).  VPU/XLU-only (no matmuls).
    is_max = pi >= jnp.max(pi, axis=-1, keepdims=True)           # (B, NC)
    comp_iota = jax.lax.broadcasted_iota(
        jnp.int32, (B, NUM_COMPONENTS), 1).astype(F32)
    first_idx = jnp.min(
        jnp.where(is_max, comp_iota, float(NUM_COMPONENTS)),
        axis=-1, keepdims=True)                                  # (B, 1)

    lane_iota = jax.lax.broadcasted_iota(jnp.int32, (B, NC2), 1)
    # OUT_UNITS == 2: component of a mu lane is lane >> 1, y-lane is lane & 1.
    lane_comp = jax.lax.shift_right_logical(lane_iota, 1).astype(F32)
    is_y = jnp.bitwise_and(lane_iota, 1) == 1
    sel_mask = lane_comp == first_idx                            # (B, NC*2)
    mu_sel = jnp.where(sel_mask, mu, 0.0)
    sx = jnp.sum(jnp.where(is_y, 0.0, mu_sel), axis=-1, keepdims=True)
    sy = jnp.sum(jnp.where(is_y, mu_sel, 0.0), axis=-1, keepdims=True)
    strokes = jnp.concatenate([sx, sy], axis=-1)                 # (B, 2)

    # ---- single lane-dense packed output store ----
    pad = jnp.zeros((B, OUT_PAD), F32)
    out_ref[...] = jnp.concatenate([strokes, mu, sigma, pi, pad], axis=-1)


# ------------------------------ host-side packing ---------------------------
def build_packed_params(key):
    """Deterministic synthetic parameters, packed into two buffers.

    Weights are stored pre-transposed (in, out), fc2 folded into the GMM head,
    whh0/whh1 packed block-diagonally, cast to bf16 at (16,128)-aligned row
    offsets; biases live in a small f32 buffer at (8,128)-aligned rows.
    """
    ks = jax.random.split(key, 16)

    def nrm(k, shape, fan_in):
        return (jnp.sqrt(2.0 / fan_in) * jax.random.normal(k, shape)).astype(F32)

    def small(k, shape):
        return (0.01 * jax.random.normal(k, shape)).astype(F32)

    O = OUTPUT
    fc1_wt = nrm(ks[0], (ENCODER_DIM, HIDDEN), ENCODER_DIM)
    fc1_b = small(ks[1], (1, HIDDEN))
    wih0_t = nrm(ks[2], (HIDDEN, 4 * O), HIDDEN)
    whh0_t = nrm(ks[3], (O, 4 * O), O)
    b0 = small(ks[4], (1, 4 * O))                          # b_ih0 + b_hh0
    wih1_t = nrm(ks[5], (O, 4 * O), O)
    whh1_t = nrm(ks[6], (O, 4 * O), O)
    b1 = small(ks[7], (1, 4 * O))                          # b_ih1 + b_hh1
    fc2_wt = nrm(ks[8], (T_INPUT * O, DIM_LAYER), T_INPUT * O)
    fc2_b = small(ks[9], (1, DIM_LAYER))
    mu_wt = nrm(ks[10], (DIM_LAYER, NC2), DIM_LAYER)
    mu_b = small(ks[11], (1, NC2))
    sig_wt = nrm(ks[12], (DIM_LAYER, NC2), DIM_LAYER)
    sig_b = small(ks[13], (1, NC2))
    pi_wt = nrm(ks[14], (DIM_LAYER, NUM_COMPONENTS), DIM_LAYER)
    pi_b = small(ks[15], (1, NUM_COMPONENTS))

    # GMM head assembled, then fc2 folded in (no nonlinearity between them).
    head_wt = jnp.concatenate([mu_wt, sig_wt, pi_wt], axis=1)    # (DIM, 20)
    head_b = jnp.concatenate([mu_b, sig_b, pi_b], axis=1)        # (1, 20)
    comb_wt = fc2_wt @ head_wt                                   # (T*O, 20)
    comb_b = fc2_b @ head_wt + head_b                            # (1, 20)

    # block-diagonal recurrent weight: rows 0:O -> cols 0:64 (layer 0),
    # rows O:2O -> cols 64:128 (layer 1).
    whh_bd = jnp.zeros((2 * O, 128), F32)
    whh_bd = whh_bd.at[0:O, 0:4 * O].set(whh0_t)
    whh_bd = whh_bd.at[O:2 * O, 4 * O:8 * O].set(whh1_t)

    # bf16 weight buffer
    wbuf = jnp.zeros((WROWS, 128), BF16)

    def putw(buf, r0, w):
        return buf.at[r0:r0 + w.shape[0], 0:w.shape[1]].set(w.astype(BF16))

    wbuf = putw(wbuf, FC1_R, fc1_wt)
    wbuf = putw(wbuf, WIH0_R, wih0_t)
    wbuf = putw(wbuf, WHH_R, whh_bd)
    wbuf = putw(wbuf, WIH1_R, wih1_t)
    wbuf = putw(wbuf, COMB_R, comb_wt)

    # f32 bias buffer (per-call data rows are appended in the wrapper)
    fbuf = jnp.zeros((FROWS, 128), F32)

    def putf(buf, r0, w):
        return buf.at[r0:r0 + w.shape[0], 0:w.shape[1]].set(w.astype(F32))

    fbuf = putf(fbuf, FC1B_R, fc1_b)
    fbuf = putf(fbuf, B0_R, b0)
    fbuf = putf(fbuf, B1_R, b1)
    fbuf = putf(fbuf, COMBB_R, comb_b)
    return wbuf, fbuf


# ------------------------------ wrapper --------------------------------------
@jax.jit
def decoder_forward(x, h0, c0, wbuf, fbuf):
    # pack x / h0 / c0 into (B, 128) data rows and append to the f32 constant
    # rows -> exactly 2 input DMAs (bf16 weights + one f32 buffer).
    dbuf = jnp.concatenate(
        [x, h0[0], h0[1], c0[0], c0[1], jnp.zeros((B, DPAD), F32)], axis=-1)
    fdata = jnp.concatenate([fbuf, dbuf], axis=0)        # (FROWS + B, 128)

    vmem = pltpu.MemorySpace.VMEM
    packed = pl.pallas_call(
        decoder_kernel,
        out_shape=jax.ShapeDtypeStruct((B, 128), F32),
        in_specs=[pl.BlockSpec(memory_space=vmem),
                  pl.BlockSpec(memory_space=vmem)],
        out_specs=pl.BlockSpec(memory_space=vmem),
    )(wbuf, fdata)

    strokes = packed[:, OUT_STROKES:OUT_STROKES + OUT_UNITS]
    mu = packed[:, OUT_MU:OUT_MU + NC2]
    sigma = packed[:, OUT_SIGMA:OUT_SIGMA + NC2]
    pi = packed[:, OUT_PI:OUT_PI + NUM_COMPONENTS]
    return strokes, mu, sigma, pi


if __name__ == "__main__":
    key = jax.random.PRNGKey(0)
    k_x, k_h, k_c, k_p = jax.random.split(key, 4)

    encoded_input = jax.random.normal(k_x, (B, ENCODER_DIM)).astype(F32)
    h0 = jax.random.normal(k_h, (NUM_LAYERS, B, OUTPUT)).astype(F32)
    c0 = jax.random.normal(k_c, (NUM_LAYERS, B, OUTPUT)).astype(F32)
    wbuf, fbuf = build_packed_params(k_p)

    strokes, out_mu, out_sigma, out_pi = decoder_forward(
        encoded_input, h0, c0, wbuf, fbuf)
    jax.block_until_ready((strokes, out_mu, out_sigma, out_pi))

    assert strokes.shape == (B, OUT_UNITS)
    assert out_mu.shape == (B, NUM_COMPONENTS * OUT_UNITS)
    assert out_sigma.shape == (B, NUM_COMPONENTS * OUT_UNITS)
    assert out_pi.shape == (B, NUM_COMPONENTS)
    assert bool(jnp.all(out_sigma > 0))
    # approx reciprocal (EUP) is used for the softmax normalization
    assert bool(jnp.allclose(jnp.sum(out_pi, axis=-1), 1.0, atol=1e-2))
    # greedy sample must equal the mean of the selected (max-pi) component
    sel_idx = jnp.argmax(out_pi, axis=-1)
    picked = out_mu.reshape(B, NUM_COMPONENTS, OUT_UNITS)[jnp.arange(B), sel_idx]
    assert bool(jnp.allclose(strokes, picked, atol=1e-5))

    print("KERNEL_OK")
</pallas_src>

<mosaic_0001>
module attributes {stable_mosaic.version = 11 : i64} {
  func.func @decoder_kernel(%arg0: memref<240x128xbf16, #tpu.memory_space<vmem>>, %arg1: memref<34x128xf32, #tpu.memory_space<vmem>>, %arg2: memref<2x128xf32, #tpu.memory_space<vmem>>) attributes {dimension_semantics = [], scalar_prefetch = 0 : i64, scratch_operands = 0 : i64, tpu.core_type = #tpu.core_type<tc>} {
    %c0 = arith.constant 0 : index
    %c0_0 = arith.constant 0 : index
    %0 = vector.load %arg0[%c0, %c0_0] : memref<240x128xbf16, #tpu.memory_space<vmem>>, vector<32x32xbf16>
    %c32 = arith.constant 32 : index
    %c0_1 = arith.constant 0 : index
    %1 = vector.load %arg0[%c32, %c0_1] : memref<240x128xbf16, #tpu.memory_space<vmem>>, vector<32x64xbf16>
    %c64 = arith.constant 64 : index
    %c0_2 = arith.constant 0 : index
    %2 = vector.load %arg0[%c64, %c0_2] : memref<240x128xbf16, #tpu.memory_space<vmem>>, vector<32x128xbf16>
    %c96 = arith.constant 96 : index
    %c0_3 = arith.constant 0 : index
    %3 = vector.load %arg0[%c96, %c0_3] : memref<240x128xbf16, #tpu.memory_space<vmem>>, vector<16x64xbf16>
    %c112 = arith.constant 112 : index
    %c0_4 = arith.constant 0 : index
    %4 = vector.load %arg0[%c112, %c0_4] : memref<240x128xbf16, #tpu.memory_space<vmem>>, vector<128x20xbf16>
    %c0_5 = arith.constant 0 : index
    %c0_6 = arith.constant 0 : index
    %5 = vector.load %arg1[%c0_5, %c0_6] : memref<34x128xf32, #tpu.memory_space<vmem>>, vector<1x32xf32>
    %c8 = arith.constant 8 : index
    %c0_7 = arith.constant 0 : index
    %6 = vector.load %arg1[%c8, %c0_7] : memref<34x128xf32, #tpu.memory_space<vmem>>, vector<1x64xf32>
    %c16 = arith.constant 16 : index
    %c0_8 = arith.constant 0 : index
    %7 = vector.load %arg1[%c16, %c0_8] : memref<34x128xf32, #tpu.memory_space<vmem>>, vector<1x64xf32>
    %c24 = arith.constant 24 : index
    %c0_9 = arith.constant 0 : index
    %8 = vector.load %arg1[%c24, %c0_9] : memref<34x128xf32, #tpu.memory_space<vmem>>, vector<1x20xf32>
    %c32_10 = arith.constant 32 : index
    %c0_11 = arith.constant 0 : index
    %9 = vector.load %arg1[%c32_10, %c0_11] : memref<34x128xf32, #tpu.memory_space<vmem>>, vector<2x128xf32>
    %10 = vector.extract_strided_slice %9 {offsets = [0, 0], sizes = [2, 32], strides = [1, 1]} : vector<2x128xf32> to vector<2x32xf32>
    %11 = vector.extract_strided_slice %9 {offsets = [0, 32], sizes = [2, 32], strides = [1, 1]} : vector<2x128xf32> to vector<2x32xf32>
    %12 = vector.extract_strided_slice %9 {offsets = [0, 64], sizes = [2, 16], strides = [1, 1]} : vector<2x128xf32> to vector<2x16xf32>
    %13 = vector.extract_strided_slice %9 {offsets = [0, 80], sizes = [2, 16], strides = [1, 1]} : vector<2x128xf32> to vector<2x16xf32>
    %14 = arith.truncf %10 : vector<2x32xf32> to vector<2x32xbf16>
    %cst = arith.constant dense<0.000000e+00> : vector<2x32xf32>
    %15 = tpu.matmul %14, %0, %cst {dimension_numbers = #tpu.dot_dimension_numbers<[1], [0], [0], [1], [0, 0, 1, 1], [], []>} : vector<2x32xbf16>, vector<32x32xbf16>, vector<2x32xf32> -> vector<2x32xf32>
    %16 = vector.broadcast %5 : vector<1x32xf32> to vector<2x32xf32>
    %17 = arith.addf %15, %16 : vector<2x32xf32>
    %cst_12 = arith.constant 0.000000e+00 : f32
    %18 = vector.broadcast %cst_12 : f32 to vector<2x32xf32>
    %19 = arith.maximumf %17, %18 : vector<2x32xf32>
    %20 = arith.truncf %19 : vector<2x32xf32> to vector<2x32xbf16>
    %cst_13 = arith.constant dense<0.000000e+00> : vector<2x64xf32>
    %21 = tpu.matmul %20, %1, %cst_13 {dimension_numbers = #tpu.dot_dimension_numbers<[1], [0], [0], [1], [0, 0, 1, 1], [], []>} : vector<2x32xbf16>, vector<32x64xbf16>, vector<2x64xf32> -> vector<2x64xf32>
    %22 = vector.broadcast %6 : vector<1x64xf32> to vector<2x64xf32>
    %23 = arith.addf %21, %22 : vector<2x64xf32>
    %24 = arith.truncf %11 : vector<2x32xf32> to vector<2x32xbf16>
    %cst_14 = arith.constant dense<0.000000e+00> : vector<2x128xf32>
    %25 = tpu.matmul %24, %2, %cst_14 {dimension_numbers = #tpu.dot_dimension_numbers<[1], [0], [0], [1], [0, 0, 1, 1], [], []>} : vector<2x32xbf16>, vector<32x128xbf16>, vector<2x128xf32> -> vector<2x128xf32>
    %26 = vector.extract_strided_slice %25 {offsets = [0, 0], sizes = [2, 64], strides = [1, 1]} : vector<2x128xf32> to vector<2x64xf32>
    %27 = arith.addf %23, %26 : vector<2x64xf32>
    %28 = arith.negf %27 : vector<2x64xf32>
    %29 = math.exp %28 : vector<2x64xf32>
    %cst_15 = arith.constant 1.000000e+00 : f32
    %30 = vector.broadcast %cst_15 : f32 to vector<2x64xf32>
    %31 = arith.addf %30, %29 : vector<2x64xf32>
    %32 = arith.divf %30, %31 : vector<2x64xf32>
    %33 = math.tanh %27 : vector<2x64xf32>
    %34 = vector.extract_strided_slice %32 {offsets = [0, 0], sizes = [2, 16], strides = [1, 1]} : vector<2x64xf32> to vector<2x16xf32>
    %35 = vector.extract_strided_slice %32 {offsets = [0, 16], sizes = [2, 16], strides = [1, 1]} : vector<2x64xf32> to vector<2x16xf32>
    %36 = vector.extract_strided_slice %33 {offsets = [0, 32], sizes = [2, 16], strides = [1, 1]} : vector<2x64xf32> to vector<2x16xf32>
    %37 = vector.extract_strided_slice %32 {offsets = [0, 48], sizes = [2, 16], strides = [1, 1]} : vector<2x64xf32> to vector<2x16xf32>
    %38 = arith.mulf %35, %12 : vector<2x16xf32>
    %39 = arith.mulf %34, %36 : vector<2x16xf32>
    %40 = arith.addf %38, %39 : vector<2x16xf32>
    %41 = math.tanh %40 : vector<2x16xf32>
    %42 = arith.mulf %37, %41 : vector<2x16xf32>
    %43 = vector.extract_strided_slice %25 {offsets = [0, 64], sizes = [2, 64], strides = [1, 1]} : vector<2x128xf32> to vector<2x64xf32>
    %44 = vector.broadcast %7 : vector<1x64xf32> to vector<2x64xf32>
    %45 = arith.addf %43, %44 : vector<2x64xf32>
    %46 = arith.truncf %42 : vector<2x16xf32> to vector<2x16xbf16>
    %cst_16 = arith.constant dense<0.000000e+00> : vector<2x64xf32>
    %47 = tpu.matmul %46, %3, %cst_16 {dimension_numbers = #tpu.dot_dimension_numbers<[1], [0], [0], [1], [0, 0, 1, 1], [], []>} : vector<2x16xbf16>, vector<16x64xbf16>, vector<2x64xf32> -> vector<2x64xf32>
    %48 = arith.addf %45, %47 : vector<2x64xf32>
    %49 = arith.negf %48 : vector<2x64xf32>
    %50 = math.exp %49 : vector<2x64xf32>
    %cst_17 = arith.constant 1.000000e+00 : f32
    %51 = vector.broadcast %cst_17 : f32 to vector<2x64xf32>
    %52 = arith.addf %51, %50 : vector<2x64xf32>
    %53 = arith.divf %51, %52 : vector<2x64xf32>
    %54 = math.tanh %48 : vector<2x64xf32>
    %55 = vector.extract_strided_slice %53 {offsets = [0, 0], sizes = [2, 16], strides = [1, 1]} : vector<2x64xf32> to vector<2x16xf32>
    %56 = vector.extract_strided_slice %53 {offsets = [0, 16], sizes = [2, 16], strides = [1, 1]} : vector<2x64xf32> to vector<2x16xf32>
    %57 = vector.extract_strided_slice %54 {offsets = [0, 32], sizes = [2, 16], strides = [1, 1]} : vector<2x64xf32> to vector<2x16xf32>
    %58 = vector.extract_strided_slice %53 {offsets = [0, 48], sizes = [2, 16], strides = [1, 1]} : vector<2x64xf32> to vector<2x16xf32>
    %59 = arith.mulf %56, %13 : vector<2x16xf32>
    %60 = arith.mulf %55, %57 : vector<2x16xf32>
    %61 = arith.addf %59, %60 : vector<2x16xf32>
    %62 = math.tanh %61 : vector<2x16xf32>
    %63 = arith.mulf %58, %62 : vector<2x16xf32>
    %64 = tpu.concatenate %42, %63 in 1 : vector<2x16xf32>, vector<2x16xf32> -> vector<2x32xf32>
    %65 = arith.truncf %64 : vector<2x32xf32> to vector<2x32xbf16>
    %cst_18 = arith.constant dense<0.000000e+00> : vector<2x128xf32>
    %66 = tpu.matmul %65, %2, %cst_18 {dimension_numbers = #tpu.dot_dimension_numbers<[1], [0], [0], [1], [0, 0, 1, 1], [], []>} : vector<2x32xbf16>, vector<32x128xbf16>, vector<2x128xf32> -> vector<2x128xf32>
    %67 = vector.extract_strided_slice %66 {offsets = [0, 0], sizes = [2, 64], strides = [1, 1]} : vector<2x128xf32> to vector<2x64xf32>
    %68 = arith.addf %23, %67 : vector<2x64xf32>
    %69 = arith.negf %68 : vector<2x64xf32>
    %70 = math.exp %69 : vector<2x64xf32>
    %cst_19 = arith.constant 1.000000e+00 : f32
    %71 = vector.broadcast %cst_19 : f32 to vector<2x64xf32>
    %72 = arith.addf %71, %70 : vector<2x64xf32>
    %73 = arith.divf %71, %72 : vector<2x64xf32>
    %74 = math.tanh %68 : vector<2x64xf32>
    %75 = vector.extract_strided_slice %73 {offsets = [0, 0], sizes = [2, 16], strides = [1, 1]} : vector<2x64xf32> to vector<2x16xf32>
    %76 = vector.extract_strided_slice %73 {offsets = [0, 16], sizes = [2, 16], strides = [1, 1]} : vector<2x64xf32> to vector<2x16xf32>
    %77 = vector.extract_strided_slice %74 {offsets = [0, 32], sizes = [2, 16], strides = [1, 1]} : vector<2x64xf32> to vector<2x16xf32>
    %78 = vector.extract_strided_slice %73 {offsets = [0, 48], sizes = [2, 16], strides = [1, 1]} : vector<2x64xf32> to vector<2x16xf32>
    %79 = arith.mulf %76, %40 : vector<2x16xf32>
    %80 = arith.mulf %75, %77 : vector<2x16xf32>
    %81 = arith.addf %79, %80 : vector<2x16xf32>
    %82 = math.tanh %81 : vector<2x16xf32>
    %83 = arith.mulf %78, %82 : vector<2x16xf32>
    %84 = vector.extract_strided_slice %66 {offsets = [0, 64], sizes = [2, 64], strides = [1, 1]} : vector<2x128xf32> to vector<2x64xf32>
    %85 = vector.broadcast %7 : vector<1x64xf32> to vector<2x64xf32>
    %86 = arith.addf %84, %85 : vector<2x64xf32>
    %87 = arith.truncf %83 : vector<2x16xf32> to vector<2x16xbf16>
    %cst_20 = arith.constant dense<0.000000e+00> : vector<2x64xf32>
    %88 = tpu.matmul %87, %3, %cst_20 {dimension_numbers = #tpu.dot_dimension_numbers<[1], [0], [0], [1], [0, 0, 1, 1], [], []>} : vector<2x16xbf16>, vector<16x64xbf16>, vector<2x64xf32> -> vector<2x64xf32>
    %89 = arith.addf %86, %88 : vector<2x64xf32>
    %90 = arith.negf %89 : vector<2x64xf32>
    %91 = math.exp %90 : vector<2x64xf32>
    %cst_21 = arith.constant 1.000000e+00 : f32
    %92 = vector.broadcast %cst_21 : f32 to vector<2x64xf32>
    %93 = arith.addf %92, %91 : vector<2x64xf32>
    %94 = arith.divf %92, %93 : vector<2x64xf32>
    %95 = math.tanh %89 : vector<2x64xf32>
    %96 = vector.extract_strided_slice %94 {offsets = [0, 0], sizes = [2, 16], strides = [1, 1]} : vector<2x64xf32> to vector<2x16xf32>
    %97 = vector.extract_strided_slice %94 {offsets = [0, 16], sizes = [2, 16], strides = [1, 1]} : vector<2x64xf32> to vector<2x16xf32>
    %98 = vector.extract_strided_slice %95 {offsets = [0, 32], sizes = [2, 16], strides = [1, 1]} : vector<2x64xf32> to vector<2x16xf32>
    %99 = vector.extract_strided_slice %94 {offsets = [0, 48], sizes = [2, 16], strides = [1, 1]} : vector<2x64xf32> to vector<2x16xf32>
    %100 = arith.mulf %97, %61 : vector<2x16xf32>
    %101 = arith.mulf %96, %98 : vector<2x16xf32>
    %102 = arith.addf %100, %101 : vector<2x16xf32>
    %103 = math.tanh %102 : vector<2x16xf32>
    %104 = arith.mulf %99, %103 : vector<2x16xf32>
    %105 = tpu.concatenate %83, %104 in 1 : vector<2x16xf32>, vector<2x16xf32> -> vector<2x32xf32>
    %106 = arith.truncf %105 : vector<2x32xf32> to vector<2x32xbf16>
    %cst_22 = arith.constant dense<0.000000e+00> : vector<2x128xf32>
    %107 = tpu.matmul %106, %2, %cst_22 {dimension_numbers = #tpu.dot_dimension_numbers<[1], [0], [0], [1], [0, 0, 1, 1], [], []>} : vector<2x32xbf16>, vector<32x128xbf16>, vector<2x128xf32> -> vector<2x128xf32>
    %108 = vector.extract_strided_slice %107 {offsets = [0, 0], sizes = [2, 64], strides = [1, 1]} : vector<2x128xf32> to vector<2x64xf32>
    %109 = arith.addf %23, %108 : vector<2x64xf32>
    %110 = arith.negf %109 : vector<2x64xf32>
    %111 = math.exp %110 : vector<2x64xf32>
    %cst_23 = arith.constant 1.000000e+00 : f32
    %112 = vector.broadcast %cst_23 : f32 to vector<2x64xf32>
    %113 = arith.addf %112, %111 : vector<2x64xf32>
    %114 = arith.divf %112, %113 : vector<2x64xf32>
    %115 = math.tanh %109 : vector<2x64xf32>
    %116 = vector.extract_strided_slice %114 {offsets = [0, 0], sizes = [2, 16], strides = [1, 1]} : vector<2x64xf32> to vector<2x16xf32>
    %117 = vector.extract_strided_slice %114 {offsets = [0, 16], sizes = [2, 16], strides = [1, 1]} : vector<2x64xf32> to vector<2x16xf32>
    %118 = vector.extract_strided_slice %115 {offsets = [0, 32], sizes = [2, 16], strides = [1, 1]} : vector<2x64xf32> to vector<2x16xf32>
    %119 = vector.extract_strided_slice %114 {offsets = [0, 48], sizes = [2, 16], strides = [1, 1]} : vector<2x64xf32> to vector<2x16xf32>
    %120 = arith.mulf %117, %81 : vector<2x16xf32>
    %121 = arith.mulf %116, %118 : vector<2x16xf32>
    %122 = arith.addf %120, %121 : vector<2x16xf32>
    %123 = math.tanh %122 : vector<2x16xf32>
    %124 = arith.mulf %119, %123 : vector<2x16xf32>
    %125 = vector.extract_strided_slice %107 {offsets = [0, 64], sizes = [2, 64], strides = [1, 1]} : vector<2x128xf32> to vector<2x64xf32>
    %126 = vector.broadcast %7 : vector<1x64xf32> to vector<2x64xf32>
    %127 = arith.addf %125, %126 : vector<2x64xf32>
    %128 = arith.truncf %124 : vector<2x16xf32> to vector<2x16xbf16>
    %cst_24 = arith.constant dense<0.000000e+00> : vector<2x64xf32>
    %129 = tpu.matmul %128, %3, %cst_24 {dimension_numbers = #tpu.dot_dimension_numbers<[1], [0], [0], [1], [0, 0, 1, 1], [], []>} : vector<2x16xbf16>, vector<16x64xbf16>, vector<2x64xf32> -> vector<2x64xf32>
    %130 = arith.addf %127, %129 : vector<2x64xf32>
    %131 = arith.negf %130 : vector<2x64xf32>
    %132 = math.exp %131 : vector<2x64xf32>
    %cst_25 = arith.constant 1.000000e+00 : f32
    %133 = vector.broadcast %cst_25 : f32 to vector<2x64xf32>
    %134 = arith.addf %133, %132 : vector<2x64xf32>
    %135 = arith.divf %133, %134 : vector<2x64xf32>
    %136 = math.tanh %130 : vector<2x64xf32>
    %137 = vector.extract_strided_slice %135 {offsets = [0, 0], sizes = [2, 16], strides = [1, 1]} : vector<2x64xf32> to vector<2x16xf32>
    %138 = vector.extract_strided_slice %135 {offsets = [0, 16], sizes = [2, 16], strides = [1, 1]} : vector<2x64xf32> to vector<2x16xf32>
    %139 = vector.extract_strided_slice %136 {offsets = [0, 32], sizes = [2, 16], strides = [1, 1]} : vector<2x64xf32> to vector<2x16xf32>
    %140 = vector.extract_strided_slice %135 {offsets = [0, 48], sizes = [2, 16], strides = [1, 1]} : vector<2x64xf32> to vector<2x16xf32>
    %141 = arith.mulf %138, %102 : vector<2x16xf32>
    %142 = arith.mulf %137, %139 : vector<2x16xf32>
    %143 = arith.addf %141, %142 : vector<2x16xf32>
    %144 = math.tanh %143 : vector<2x16xf32>
    %145 = arith.mulf %140, %144 : vector<2x16xf32>
    %146 = tpu.concatenate %124, %145 in 1 : vector<2x16xf32>, vector<2x16xf32> -> vector<2x32xf32>
    %147 = arith.truncf %146 : vector<2x32xf32> to vector<2x32xbf16>
    %cst_26 = arith.constant dense<0.000000e+00> : vector<2x128xf32>
    %148 = tpu.matmul %147, %2, %cst_26 {dimension_numbers = #tpu.dot_dimension_numbers<[1], [0], [0], [1], [0, 0, 1, 1], [], []>} : vector<2x32xbf16>, vector<32x128xbf16>, vector<2x128xf32> -> vector<2x128xf32>
    %149 = vector.extract_strided_slice %148 {offsets = [0, 0], sizes = [2, 64], strides = [1, 1]} : vector<2x128xf32> to vector<2x64xf32>
    %150 = arith.addf %23, %149 : vector<2x64xf32>
    %151 = arith.negf %150 : vector<2x64xf32>
    %152 = math.exp %151 : vector<2x64xf32>
    %cst_27 = arith.constant 1.000000e+00 : f32
    %153 = vector.broadcast %cst_27 : f32 to vector<2x64xf32>
    %154 = arith.addf %153, %152 : vector<2x64xf32>
    %155 = arith.divf %153, %154 : vector<2x64xf32>
    %156 = math.tanh %150 : vector<2x64xf32>
    %157 = vector.extract_strided_slice %155 {offsets = [0, 0], sizes = [2, 16], strides = [1, 1]} : vector<2x64xf32> to vector<2x16xf32>
    %158 = vector.extract_strided_slice %155 {offsets = [0, 16], sizes = [2, 16], strides = [1, 1]} : vector<2x64xf32> to vector<2x16xf32>
    %159 = vector.extract_strided_slice %156 {offsets = [0, 32], sizes = [2, 16], strides = [1, 1]} : vector<2x64xf32> to vector<2x16xf32>
    %160 = vector.extract_strided_slice %155 {offsets = [0, 48], sizes = [2, 16], strides = [1, 1]} : vector<2x64xf32> to vector<2x16xf32>
    %161 = arith.mulf %158, %122 : vector<2x16xf32>
    %162 = arith.mulf %157, %159 : vector<2x16xf32>
    %163 = arith.addf %161, %162 : vector<2x16xf32>
    %164 = math.tanh %163 : vector<2x16xf32>
    %165 = arith.mulf %160, %164 : vector<2x16xf32>
    %166 = vector.extract_strided_slice %148 {offsets = [0, 64], sizes = [2, 64], strides = [1, 1]} : vector<2x128xf32> to vector<2x64xf32>
    %167 = vector.broadcast %7 : vector<1x64xf32> to vector<2x64xf32>
    %168 = arith.addf %166, %167 : vector<2x64xf32>
    %169 = arith.truncf %165 : vector<2x16xf32> to vector<2x16xbf16>
    %cst_28 = arith.constant dense<0.000000e+00> : vector<2x64xf32>
    %170 = tpu.matmul %169, %3, %cst_28 {dimension_numbers = #tpu.dot_dimension_numbers<[1], [0], [0], [1], [0, 0, 1, 1], [], []>} : vector<2x16xbf16>, vector<16x64xbf16>, vector<2x64xf32> -> vector<2x64xf32>
    %171 = arith.addf %168, %170 : vector<2x64xf32>
    %172 = arith.negf %171 : vector<2x64xf32>
    %173 = math.exp %172 : vector<2x64xf32>
    %cst_29 = arith.constant 1.000000e+00 : f32
    %174 = vector.broadcast %cst_29 : f32 to vector<2x64xf32>
    %175 = arith.addf %174, %173 : vector<2x64xf32>
    %176 = arith.divf %174, %175 : vector<2x64xf32>
    %177 = math.tanh %171 : vector<2x64xf32>
    %178 = vector.extract_strided_slice %176 {offsets = [0, 0], sizes = [2, 16], strides = [1, 1]} : vector<2x64xf32> to vector<2x16xf32>
    %179 = vector.extract_strided_slice %176 {offsets = [0, 16], sizes = [2, 16], strides = [1, 1]} : vector<2x64xf32> to vector<2x16xf32>
    %180 = vector.extract_strided_slice %177 {offsets = [0, 32], sizes = [2, 16], strides = [1, 1]} : vector<2x64xf32> to vector<2x16xf32>
    %181 = vector.extract_strided_slice %176 {offsets = [0, 48], sizes = [2, 16], strides = [1, 1]} : vector<2x64xf32> to vector<2x16xf32>
    %182 = arith.mulf %179, %143 : vector<2x16xf32>
    %183 = arith.mulf %178, %180 : vector<2x16xf32>
    %184 = arith.addf %182, %183 : vector<2x16xf32>
    %185 = math.tanh %184 : vector<2x16xf32>
    %186 = arith.mulf %181, %185 : vector<2x16xf32>
    %187 = tpu.concatenate %165, %186 in 1 : vector<2x16xf32>, vector<2x16xf32> -> vector<2x32xf32>
    %188 = arith.truncf %187 : vector<2x32xf32> to vector<2x32xbf16>
    %cst_30 = arith.constant dense<0.000000e+00> : vector<2x128xf32>
    %189 = tpu.matmul %188, %2, %cst_30 {dimension_numbers = #tpu.dot_dimension_numbers<[1], [0], [0], [1], [0, 0, 1, 1], [], []>} : vector<2x32xbf16>, vector<32x128xbf16>, vector<2x128xf32> -> vector<2x128xf32>
    %190 = vector.extract_strided_slice %189 {offsets = [0, 0], sizes = [2, 64], strides = [1, 1]} : vector<2x128xf32> to vector<2x64xf32>
    %191 = arith.addf %23, %190 : vector<2x64xf32>
    %192 = arith.negf %191 : vector<2x64xf32>
    %193 = math.exp %192 : vector<2x64xf32>
    %cst_31 = arith.constant 1.000000e+00 : f32
    %194 = vector.broadcast %cst_31 : f32 to vector<2x64xf32>
    %195 = arith.addf %194, %193 : vector<2x64xf32>
    %196 = arith.divf %194, %195 : vector<2x64xf32>
    %197 = math.tanh %191 : vector<2x64xf32>
    %198 = vector.extract_strided_slice %196 {offsets = [0, 0], sizes = [2, 16], strides = [1, 1]} : vector<2x64xf32> to vector<2x16xf32>
    %199 = vector.extract_strided_slice %196 {offsets = [0, 16], sizes = [2, 16], strides = [1, 1]} : vector<2x64xf32> to vector<2x16xf32>
    %200 = vector.extract_strided_slice %197 {offsets = [0, 32], sizes = [2, 16], strides = [1, 1]} : vector<2x64xf32> to vector<2x16xf32>
    %201 = vector.extract_strided_slice %196 {offsets = [0, 48], sizes = [2, 16], strides = [1, 1]} : vector<2x64xf32> to vector<2x16xf32>
    %202 = arith.mulf %199, %163 : vector<2x16xf32>
    %203 = arith.mulf %198, %200 : vector<2x16xf32>
    %204 = arith.addf %202, %203 : vector<2x16xf32>
    %205 = math.tanh %204 : vector<2x16xf32>
    %206 = arith.mulf %201, %205 : vector<2x16xf32>
    %207 = vector.extract_strided_slice %189 {offsets = [0, 64], sizes = [2, 64], strides = [1, 1]} : vector<2x128xf32> to vector<2x64xf32>
    %208 = vector.broadcast %7 : vector<1x64xf32> to vector<2x64xf32>
    %209 = arith.addf %207, %208 : vector<2x64xf32>
    %210 = arith.truncf %206 : vector<2x16xf32> to vector<2x16xbf16>
    %cst_32 = arith.constant dense<0.000000e+00> : vector<2x64xf32>
    %211 = tpu.matmul %210, %3, %cst_32 {dimension_numbers = #tpu.dot_dimension_numbers<[1], [0], [0], [1], [0, 0, 1, 1], [], []>} : vector<2x16xbf16>, vector<16x64xbf16>, vector<2x64xf32> -> vector<2x64xf32>
    %212 = arith.addf %209, %211 : vector<2x64xf32>
    %213 = arith.negf %212 : vector<2x64xf32>
    %214 = math.exp %213 : vector<2x64xf32>
    %cst_33 = arith.constant 1.000000e+00 : f32
    %215 = vector.broadcast %cst_33 : f32 to vector<2x64xf32>
    %216 = arith.addf %215, %214 : vector<2x64xf32>
    %217 = arith.divf %215, %216 : vector<2x64xf32>
    %218 = math.tanh %212 : vector<2x64xf32>
    %219 = vector.extract_strided_slice %217 {offsets = [0, 0], sizes = [2, 16], strides = [1, 1]} : vector<2x64xf32> to vector<2x16xf32>
    %220 = vector.extract_strided_slice %217 {offsets = [0, 16], sizes = [2, 16], strides = [1, 1]} : vector<2x64xf32> to vector<2x16xf32>
    %221 = vector.extract_strided_slice %218 {offsets = [0, 32], sizes = [2, 16], strides = [1, 1]} : vector<2x64xf32> to vector<2x16xf32>
    %222 = vector.extract_strided_slice %217 {offsets = [0, 48], sizes = [2, 16], strides = [1, 1]} : vector<2x64xf32> to vector<2x16xf32>
    %223 = arith.mulf %220, %184 : vector<2x16xf32>
    %224 = arith.mulf %219, %221 : vector<2x16xf32>
    %225 = arith.addf %223, %224 : vector<2x16xf32>
    %226 = math.tanh %225 : vector<2x16xf32>
    %227 = arith.mulf %222, %226 : vector<2x16xf32>
    %228 = tpu.concatenate %206, %227 in 1 : vector<2x16xf32>, vector<2x16xf32> -> vector<2x32xf32>
    %229 = arith.truncf %228 : vector<2x32xf32> to vector<2x32xbf16>
    %cst_34 = arith.constant dense<0.000000e+00> : vector<2x128xf32>
    %230 = tpu.matmul %229, %2, %cst_34 {dimension_numbers = #tpu.dot_dimension_numbers<[1], [0], [0], [1], [0, 0, 1, 1], [], []>} : vector<2x32xbf16>, vector<32x128xbf16>, vector<2x128xf32> -> vector<2x128xf32>
    %231 = vector.extract_strided_slice %230 {offsets = [0, 0], sizes = [2, 64], strides = [1, 1]} : vector<2x128xf32> to vector<2x64xf32>
    %232 = arith.addf %23, %231 : vector<2x64xf32>
    %233 = arith.negf %232 : vector<2x64xf32>
    %234 = math.exp %233 : vector<2x64xf32>
    %cst_35 = arith.constant 1.000000e+00 : f32
    %235 = vector.broadcast %cst_35 : f32 to vector<2x64xf32>
    %236 = arith.addf %235, %234 : vector<2x64xf32>
    %237 = arith.divf %235, %236 : vector<2x64xf32>
    %238 = math.tanh %232 : vector<2x64xf32>
    %239 = vector.extract_strided_slice %237 {offsets = [0, 0], sizes = [2, 16], strides = [1, 1]} : vector<2x64xf32> to vector<2x16xf32>
    %240 = vector.extract_strided_slice %237 {offsets = [0, 16], sizes = [2, 16], strides = [1, 1]} : vector<2x64xf32> to vector<2x16xf32>
    %241 = vector.extract_strided_slice %238 {offsets = [0, 32], sizes = [2, 16], strides = [1, 1]} : vector<2x64xf32> to vector<2x16xf32>
    %242 = vector.extract_strided_slice %237 {offsets = [0, 48], sizes = [2, 16], strides = [1, 1]} : vector<2x64xf32> to vector<2x16xf32>
    %243 = arith.mulf %240, %204 : vector<2x16xf32>
    %244 = arith.mulf %239, %241 : vector<2x16xf32>
    %245 = arith.addf %243, %244 : vector<2x16xf32>
    %246 = math.tanh %245 : vector<2x16xf32>
    %247 = arith.mulf %242, %246 : vector<2x16xf32>
    %248 = vector.extract_strided_slice %230 {offsets = [0, 64], sizes = [2, 64], strides = [1, 1]} : vector<2x128xf32> to vector<2x64xf32>
    %249 = vector.broadcast %7 : vector<1x64xf32> to vector<2x64xf32>
    %250 = arith.addf %248, %249 : vector<2x64xf32>
    %251 = arith.truncf %247 : vector<2x16xf32> to vector<2x16xbf16>
    %cst_36 = arith.constant dense<0.000000e+00> : vector<2x64xf32>
    %252 = tpu.matmul %251, %3, %cst_36 {dimension_numbers = #tpu.dot_dimension_numbers<[1], [0], [0], [1], [0, 0, 1, 1], [], []>} : vector<2x16xbf16>, vector<16x64xbf16>, vector<2x64xf32> -> vector<2x64xf32>
    %253 = arith.addf %250, %252 : vector<2x64xf32>
    %254 = arith.negf %253 : vector<2x64xf32>
    %255 = math.exp %254 : vector<2x64xf32>
    %cst_37 = arith.constant 1.000000e+00 : f32
    %256 = vector.broadcast %cst_37 : f32 to vector<2x64xf32>
    %257 = arith.addf %256, %255 : vector<2x64xf32>
    %258 = arith.divf %256, %257 : vector<2x64xf32>
    %259 = math.tanh %253 : vector<2x64xf32>
    %260 = vector.extract_strided_slice %258 {offsets = [0, 0], sizes = [2, 16], strides = [1, 1]} : vector<2x64xf32> to vector<2x16xf32>
    %261 = vector.extract_strided_slice %258 {offsets = [0, 16], sizes = [2, 16], strides = [1, 1]} : vector<2x64xf32> to vector<2x16xf32>
    %262 = vector.extract_strided_slice %259 {offsets = [0, 32], sizes = [2, 16], strides = [1, 1]} : vector<2x64xf32> to vector<2x16xf32>
    %263 = vector.extract_strided_slice %258 {offsets = [0, 48], sizes = [2, 16], strides = [1, 1]} : vector<2x64xf32> to vector<2x16xf32>
    %264 = arith.mulf %261, %225 : vector<2x16xf32>
    %265 = arith.mulf %260, %262 : vector<2x16xf32>
    %266 = arith.addf %264, %265 : vector<2x16xf32>
    %267 = math.tanh %266 : vector<2x16xf32>
    %268 = arith.mulf %263, %267 : vector<2x16xf32>
    %269 = tpu.concatenate %247, %268 in 1 : vector<2x16xf32>, vector<2x16xf32> -> vector<2x32xf32>
    %270 = arith.truncf %269 : vector<2x32xf32> to vector<2x32xbf16>
    %cst_38 = arith.constant dense<0.000000e+00> : vector<2x128xf32>
    %271 = tpu.matmul %270, %2, %cst_38 {dimension_numbers = #tpu.dot_dimension_numbers<[1], [0], [0], [1], [0, 0, 1, 1], [], []>} : vector<2x32xbf16>, vector<32x128xbf16>, vector<2x128xf32> -> vector<2x128xf32>
    %272 = vector.extract_strided_slice %271 {offsets = [0, 0], sizes = [2, 64], strides = [1, 1]} : vector<2x128xf32> to vector<2x64xf32>
    %273 = arith.addf %23, %272 : vector<2x64xf32>
    %274 = arith.negf %273 : vector<2x64xf32>
    %275 = math.exp %274 : vector<2x64xf32>
    %cst_39 = arith.constant 1.000000e+00 : f32
    %276 = vector.broadcast %cst_39 : f32 to vector<2x64xf32>
    %277 = arith.addf %276, %275 : vector<2x64xf32>
    %278 = arith.divf %276, %277 : vector<2x64xf32>
    %279 = math.tanh %273 : vector<2x64xf32>
    %280 = vector.extract_strided_slice %278 {offsets = [0, 0], sizes = [2, 16], strides = [1, 1]} : vector<2x64xf32> to vector<2x16xf32>
    %281 = vector.extract_strided_slice %278 {offsets = [0, 16], sizes = [2, 16], strides = [1, 1]} : vector<2x64xf32> to vector<2x16xf32>
    %282 = vector.extract_strided_slice %279 {offsets = [0, 32], sizes = [2, 16], strides = [1, 1]} : vector<2x64xf32> to vector<2x16xf32>
    %283 = vector.extract_strided_slice %278 {offsets = [0, 48], sizes = [2, 16], strides = [1, 1]} : vector<2x64xf32> to vector<2x16xf32>
    %284 = arith.mulf %281, %245 : vector<2x16xf32>
    %285 = arith.mulf %280, %282 : vector<2x16xf32>
    %286 = arith.addf %284, %285 : vector<2x16xf32>
    %287 = math.tanh %286 : vector<2x16xf32>
    %288 = arith.mulf %283, %287 : vector<2x16xf32>
    %289 = vector.extract_strided_slice %271 {offsets = [0, 64], sizes = [2, 64], strides = [1, 1]} : vector<2x128xf32> to vector<2x64xf32>
    %290 = vector.broadcast %7 : vector<1x64xf32> to vector<2x64xf32>
    %291 = arith.addf %289, %290 : vector<2x64xf32>
    %292 = arith.truncf %288 : vector<2x16xf32> to vector<2x16xbf16>
    %cst_40 = arith.constant dense<0.000000e+00> : vector<2x64xf32>
    %293 = tpu.matmul %292, %3, %cst_40 {dimension_numbers = #tpu.dot_dimension_numbers<[1], [0], [0], [1], [0, 0, 1, 1], [], []>} : vector<2x16xbf16>, vector<16x64xbf16>, vector<2x64xf32> -> vector<2x64xf32>
    %294 = arith.addf %291, %293 : vector<2x64xf32>
    %295 = arith.negf %294 : vector<2x64xf32>
    %296 = math.exp %295 : vector<2x64xf32>
    %cst_41 = arith.constant 1.000000e+00 : f32
    %297 = vector.broadcast %cst_41 : f32 to vector<2x64xf32>
    %298 = arith.addf %297, %296 : vector<2x64xf32>
    %299 = arith.divf %297, %298 : vector<2x64xf32>
    %300 = math.tanh %294 : vector<2x64xf32>
    %301 = vector.extract_strided_slice %299 {offsets = [0, 0], sizes = [2, 16], strides = [1, 1]} : vector<2x64xf32> to vector<2x16xf32>
    %302 = vector.extract_strided_slice %299 {offsets = [0, 16], sizes = [2, 16], strides = [1, 1]} : vector<2x64xf32> to vector<2x16xf32>
    %303 = vector.extract_strided_slice %300 {offsets = [0, 32], sizes = [2, 16], strides = [1, 1]} : vector<2x64xf32> to vector<2x16xf32>
    %304 = vector.extract_strided_slice %299 {offsets = [0, 48], sizes = [2, 16], strides = [1, 1]} : vector<2x64xf32> to vector<2x16xf32>
    %305 = arith.mulf %302, %266 : vector<2x16xf32>
    %306 = arith.mulf %301, %303 : vector<2x16xf32>
    %307 = arith.addf %305, %306 : vector<2x16xf32>
    %308 = math.tanh %307 : vector<2x16xf32>
    %309 = arith.mulf %304, %308 : vector<2x16xf32>
    %310 = tpu.concatenate %288, %309 in 1 : vector<2x16xf32>, vector<2x16xf32> -> vector<2x32xf32>
    %311 = arith.truncf %310 : vector<2x32xf32> to vector<2x32xbf16>
    %cst_42 = arith.constant dense<0.000000e+00> : vector<2x128xf32>
    %312 = tpu.matmul %311, %2, %cst_42 {dimension_numbers = #tpu.dot_dimension_numbers<[1], [0], [0], [1], [0, 0, 1, 1], [], []>} : vector<2x32xbf16>, vector<32x128xbf16>, vector<2x128xf32> -> vector<2x128xf32>
    %313 = vector.extract_strided_slice %312 {offsets = [0, 0], sizes = [2, 64], strides = [1, 1]} : vector<2x128xf32> to vector<2x64xf32>
    %314 = arith.addf %23, %313 : vector<2x64xf32>
    %315 = arith.negf %314 : vector<2x64xf32>
    %316 = math.exp %315 : vector<2x64xf32>
    %cst_43 = arith.constant 1.000000e+00 : f32
    %317 = vector.broadcast %cst_43 : f32 to vector<2x64xf32>
    %318 = arith.addf %317, %316 : vector<2x64xf32>
    %319 = arith.divf %317, %318 : vector<2x64xf32>
    %320 = math.tanh %314 : vector<2x64xf32>
    %321 = vector.extract_strided_slice %319 {offsets = [0, 0], sizes = [2, 16], strides = [1, 1]} : vector<2x64xf32> to vector<2x16xf32>
    %322 = vector.extract_strided_slice %319 {offsets = [0, 16], sizes = [2, 16], strides = [1, 1]} : vector<2x64xf32> to vector<2x16xf32>
    %323 = vector.extract_strided_slice %320 {offsets = [0, 32], sizes = [2, 16], strides = [1, 1]} : vector<2x64xf32> to vector<2x16xf32>
    %324 = vector.extract_strided_slice %319 {offsets = [0, 48], sizes = [2, 16], strides = [1, 1]} : vector<2x64xf32> to vector<2x16xf32>
    %325 = arith.mulf %322, %286 : vector<2x16xf32>
    %326 = arith.mulf %321, %323 : vector<2x16xf32>
    %327 = arith.addf %325, %326 : vector<2x16xf32>
    %328 = math.tanh %327 : vector<2x16xf32>
    %329 = arith.mulf %324, %328 : vector<2x16xf32>
    %330 = vector.extract_strided_slice %312 {offsets = [0, 64], sizes = [2, 64], strides = [1, 1]} : vector<2x128xf32> to vector<2x64xf32>
    %331 = vector.broadcast %7 : vector<1x64xf32> to vector<2x64xf32>
    %332 = arith.addf %330, %331 : vector<2x64xf32>
    %333 = arith.truncf %329 : vector<2x16xf32> to vector<2x16xbf16>
    %cst_44 = arith.constant dense<0.000000e+00> : vector<2x64xf32>
    %334 = tpu.matmul %333, %3, %cst_44 {dimension_numbers = #tpu.dot_dimension_numbers<[1], [0], [0], [1], [0, 0, 1, 1], [], []>} : vector<2x16xbf16>, vector<16x64xbf16>, vector<2x64xf32> -> vector<2x64xf32>
    %335 = arith.addf %332, %334 : vector<2x64xf32>
    %336 = arith.negf %335 : vector<2x64xf32>
    %337 = math.exp %336 : vector<2x64xf32>
    %cst_45 = arith.constant 1.000000e+00 : f32
    %338 = vector.broadcast %cst_45 : f32 to vector<2x64xf32>
    %339 = arith.addf %338, %337 : vector<2x64xf32>
    %340 = arith.divf %338, %339 : vector<2x64xf32>
    %341 = math.tanh %335 : vector<2x64xf32>
    %342 = vector.extract_strided_slice %340 {offsets = [0, 0], sizes = [2, 16], strides = [1, 1]} : vector<2x64xf32> to vector<2x16xf32>
    %343 = vector.extract_strided_slice %340 {offsets = [0, 16], sizes = [2, 16], strides = [1, 1]} : vector<2x64xf32> to vector<2x16xf32>
    %344 = vector.extract_strided_slice %341 {offsets = [0, 32], sizes = [2, 16], strides = [1, 1]} : vector<2x64xf32> to vector<2x16xf32>
    %345 = vector.extract_strided_slice %340 {offsets = [0, 48], sizes = [2, 16], strides = [1, 1]} : vector<2x64xf32> to vector<2x16xf32>
    %346 = arith.mulf %343, %307 : vector<2x16xf32>
    %347 = arith.mulf %342, %344 : vector<2x16xf32>
    %348 = arith.addf %346, %347 : vector<2x16xf32>
    %349 = math.tanh %348 : vector<2x16xf32>
    %350 = arith.mulf %345, %349 : vector<2x16xf32>
    %351 = tpu.concatenate %63, %104, %145, %186, %227, %268, %309, %350 in 1 : vector<2x16xf32>, vector<2x16xf32>, vector<2x16xf32>, vector<2x16xf32>, vector<2x16xf32>, vector<2x16xf32>, vector<2x16xf32>, vector<2x16xf32> -> vector<2x128xf32>
    %352 = arith.truncf %351 : vector<2x128xf32> to vector<2x128xbf16>
    %cst_46 = arith.constant dense<0.000000e+00> : vector<2x20xf32>
    %353 = tpu.matmul %352, %4, %cst_46 {dimension_numbers = #tpu.dot_dimension_numbers<[1], [0], [0], [1], [0, 0, 1, 1], [], []>} : vector<2x128xbf16>, vector<128x20xbf16>, vector<2x20xf32> -> vector<2x20xf32>
    %354 = vector.broadcast %8 : vector<1x20xf32> to vector<2x20xf32>
    %355 = arith.addf %353, %354 : vector<2x20xf32>
    %356 = vector.extract_strided_slice %355 {offsets = [0, 0], sizes = [2, 8], strides = [1, 1]} : vector<2x20xf32> to vector<2x8xf32>
    %357 = vector.extract_strided_slice %355 {offsets = [0, 8], sizes = [2, 8], strides = [1, 1]} : vector<2x20xf32> to vector<2x8xf32>
    %358 = math.exp %357 : vector<2x8xf32>
    %359 = vector.extract_strided_slice %355 {offsets = [0, 16], sizes = [2, 4], strides = [1, 1]} : vector<2x20xf32> to vector<2x4xf32>
    %cst_47 = arith.constant dense<0xFF800000> : vector<2xf32>
    %360 = vector.multi_reduction <maximumf>, %359, %cst_47 [1] : vector<2x4xf32> to vector<2xf32>
    %361 = vector.shape_cast %360 : vector<2xf32> to vector<2x1xf32>
    %362 = vector.broadcast %361 : vector<2x1xf32> to vector<2x4xf32>
    %363 = arith.subf %359, %362 : vector<2x4xf32>
    %364 = math.exp %363 : vector<2x4xf32>
    %cst_48 = arith.constant dense<0.000000e+00> : vector<2xf32>
    %365 = vector.multi_reduction <add>, %364, %cst_48 [1] : vector<2x4xf32> to vector<2xf32>
    %366 = vector.shape_cast %365 : vector<2xf32> to vector<2x1xf32>
    %367 = tpu.reciprocal %366 {approx = true} : vector<2x1xf32> -> vector<2x1xf32>
    %368 = vector.broadcast %367 : vector<2x1xf32> to vector<2x4xf32>
    %369 = arith.mulf %364, %368 : vector<2x4xf32>
    %cst_49 = arith.constant dense<0xFF800000> : vector<2xf32>
    %370 = vector.multi_reduction <maximumf>, %369, %cst_49 [1] : vector<2x4xf32> to vector<2xf32>
    %371 = vector.shape_cast %370 : vector<2xf32> to vector<2x1xf32>
    %372 = vector.broadcast %371 : vector<2x1xf32> to vector<2x4xf32>
    %373 = arith.cmpf oge, %369, %372 : vector<2x4xf32>
    %374 = tpu.iota {dimensions = array<i32: 1>} : vector<2x4xi32>
    %375 = arith.sitofp %374 : vector<2x4xi32> to vector<2x4xf32>
    %cst_50 = arith.constant 4.000000e+00 : f32
    %376 = vector.broadcast %cst_50 : f32 to vector<2x4xf32>
    %377 = arith.select %373, %375, %376 : vector<2x4xi1>, vector<2x4xf32>
    %cst_51 = arith.constant dense<0x7F800000> : vector<2xf32>
    %378 = vector.multi_reduction <minimumf>, %377, %cst_51 [1] : vector<2x4xf32> to vector<2xf32>
    %379 = vector.shape_cast %378 : vector<2xf32> to vector<2x1xf32>
    %380 = tpu.iota {dimensions = array<i32: 1>} : vector<2x8xi32>
    %c1_i32 = arith.constant 1 : i32
    %381 = vector.broadcast %c1_i32 : i32 to vector<2x8xi32>
    %382 = arith.shrui %380, %381 : vector<2x8xi32>
    %383 = arith.sitofp %382 : vector<2x8xi32> to vector<2x8xf32>
    %c1_i32_52 = arith.constant 1 : i32
    %384 = vector.broadcast %c1_i32_52 : i32 to vector<2x8xi32>
    %385 = arith.andi %380, %384 : vector<2x8xi32>
    %c1_i32_53 = arith.constant 1 : i32
    %386 = vector.broadcast %c1_i32_53 : i32 to vector<2x8xi32>
    %387 = arith.cmpi eq, %385, %386 : vector<2x8xi32>
    %388 = vector.broadcast %379 : vector<2x1xf32> to vector<2x8xf32>
    %389 = arith.cmpf oeq, %383, %388 : vector<2x8xf32>
    %cst_54 = arith.constant 0.000000e+00 : f32
    %390 = vector.broadcast %cst_54 : f32 to vector<2x8xf32>
    %391 = arith.select %389, %356, %390 : vector<2x8xi1>, vector<2x8xf32>
    %cst_55 = arith.constant 0.000000e+00 : f32
    %392 = vector.broadcast %cst_55 : f32 to vector<2x8xf32>
    %393 = arith.select %387, %392, %391 : vector<2x8xi1>, vector<2x8xf32>
    %cst_56 = arith.constant dense<0.000000e+00> : vector<2xf32>
    %394 = vector.multi_reduction <add>, %393, %cst_56 [1] : vector<2x8xf32> to vector<2xf32>
    %395 = vector.shape_cast %394 : vector<2xf32> to vector<2x1xf32>
    %cst_57 = arith.constant 0.000000e+00 : f32
    %396 = vector.broadcast %cst_57 : f32 to vector<2x8xf32>
    %397 = arith.select %387, %391, %396 : vector<2x8xi1>, vector<2x8xf32>
    %cst_58 = arith.constant dense<0.000000e+00> : vector<2xf32>
    %398 = vector.multi_reduction <add>, %397, %cst_58 [1] : vector<2x8xf32> to vector<2xf32>
    %399 = vector.shape_cast %398 : vector<2xf32> to vector<2x1xf32>
    %400 = tpu.concatenate %395, %399 in 1 : vector<2x1xf32>, vector<2x1xf32> -> vector<2x2xf32>
    %cst_59 = arith.constant 0.000000e+00 : f32
    %401 = vector.broadcast %cst_59 : f32 to vector<2x106xf32>
    %402 = tpu.concatenate %400, %356, %358, %369, %401 in 1 : vector<2x2xf32>, vector<2x8xf32>, vector<2x8xf32>, vector<2x4xf32>, vector<2x106xf32> -> vector<2x128xf32>
    %c0_60 = arith.constant 0 : index
    %c0_61 = arith.constant 0 : index
    %403 = vector.load %arg2[%c0_60, %c0_61] : memref<2x128xf32, #tpu.memory_space<vmem>>, vector<2x128xf32>
    tpu.vector_store %arg2[%c0_60, %c0_61], %402 {strides = array<i32>} : memref<2x128xf32, #tpu.memory_space<vmem>>, vector<2x128xf32>,
    return
  }
}

</mosaic_0001>

<bundles_post_ra>
// kernel: decoder_forward.1
= control target key start
LH: loop header
LB: loop body
LE: loop exit
PB: predicated region body
PF: predicated region fallthrough
CT: control target
= control target key end

     0   :  { %7 = vsyncpa [#allocation3], 0  ;;  %s2086_s9 = smov [#allocation2]   ;;  %s2468_s0 = inlined_call_operand.hbm [shape: bf16[240,128], index: 0, kind: input, shape index: {}]   ;;  %s2469_s1 = inlined_call_operand.vmem [shape: f32[34,128], index: 1, kind: input, shape index: {}]   ;;  %s2470_s2 = inlined_call_operand.vmem [shape: f32[2,128], index: 2, kind: output, shape index: {}]  }
   0x1   :  { %s13_s10 = sshll.u32 %s2086_s9, 4  ;;  %s14_s10 = int_to_ptr.vmem [resolvable:$true] %s13_s10 }
   0x2   :  { %s2072_s11 = scalar_lea.vmem %s14_s10, 1920  ;;  %p2077_p1 = scmp.lt.s32.totalorder %s14_s10, %s14_s10 }
   0x3   :  { %p2073_p0 = scmp.ne.s32.totalorder %s14_s10, %s2072_s11  ;;  %p2078_p2 = scmp.lt.s32.totalorder %s2072_s11, %s2072_s11 }
   0x5   :  { %p2079_p3 = por %p2078_p2, %p2077_p1 }
   0x7   :  { %p2080_p4 = pnand %p2079_p3, %p2073_p0 }
   0x9   :  { %2083 = shalt.err (!%p2080_p4)
}
   0xa   :  { %s2087_s12 = smov 64   ;;  %s2088_s13 = smov 4  }
   0xb   :  { %19 = dma.hbm_to_vmem [thread:$0]  %s2468_s0, 1920, %s14_s10, [#allocation3], %s2087_s12, %s2087_s12, %s2088_s13  }
   0xc   :  { %2084 = dma.done.wait [#allocation3], 1920  }
   0xd   :  { %2085 = vsyncadd [#allocation3], 4294965376  ;;  %v2089_v0 = vmov 0.0   ;;  %vm2090_vm0 = vmmov 0   ;;  %v1915_v1 = vld [vmem:[#allocation2 + $0x8] sm:$0xff]   ;;  %v1916_v2 = vld [vmem:[#allocation2] sm:$0xff]  }
   0xe   :  { %1755 = vmatprep.subr.bf16.mxu1 %v2089_v0  ;;  %1759 = vmatprep.mubr.msk.bf16.mxu1 %vm2090_vm0, %v2089_v0  ;;  %v2127_v3 = vld [vmem:[%s2469_s1 + $0x20] sm:$0x3]  ;;  %vm78_vm1 = vcmask 261120   ;;  %v1917_v5 = vld [vmem:[#allocation2 + $0x18] sm:$0xff]   ;;  %s2091_s0 = smov 96   ;;  %v1918_v6 = vld [vmem:[#allocation2 + $0x10] sm:$0xff]  }
   0xf   :  { %1785 = vmatprep.subr.bf16.mxu0 %v2089_v0  ;;  %1789 = vmatprep.mubr.msk.bf16.mxu0 %vm2090_vm0, %v2089_v0  ;;  %v61_v4 = vpack.c.bf16 %v2127_v3, %v2127_v3  ;;  %v2139_v7 = vld [vmem:[#allocation2 + $0x28] sm:$0xff]   ;;  %v2143_v8 = vld [vmem:[#allocation2 + $0x20] sm:$0xff]   ;;  %s2092_s18 = smov 80   ;;  %s2093_s23 = smov 16   ;;  %v2173_v40 = vld [vmem:[#allocation2 + $0x30] sm:$0xff]   ;;  %vm289_vm2 = vcmask 130048  }
  0x10   :  { %1756 = vmatpush3.bf16.msra.mxu1 %v1915_v1  ;;  %1786 = vmatpush3.bf16.msra.mxu0 %v2139_v7  ;;  %v1647_v9 = vld [vmem:[%s2469_s1] ss:$0 sm:$0xff]  ;;  %v1651_v20 = vld [vmem:[%s2469_s1 + $0x8] ss:$0 sm:$0xff]  ;;  %s2094_s24 = smov 32   ;;  %s2095_s27 = smov 48  }
  0x11   :  { %1757 = vmatprep.subr.bf16.mxu1 %v2089_v0  ;;  %184 = vrot.lane.b32.xlu0 %v61_v4, %s2091_s0  ;;  %v1659_v42 = vld [vmem:[%s2469_s1 + $0x10] ss:$0 sm:$0xff]  ;;  %s2096_s28 = smov 112   ;;  %vm1467_vm3 = vcmask 392192   ;;  %vm1469_vm4 = vcmask 523264   ;;  %vm1471_vm5 = vcmask 654336  }
  0x12   :  { %1787 = vmatprep.subr.bf16.mxu0 %v2089_v0  ;;  %250 = vrot.lane.b32.xlu1 %v2127_v3, %s2092_s18  ;;  %vm1473_vm6 = vcmask 785408   ;;  %vm1475_vm7 = vcmask 916480   ;;  %vm1572_vm8 = vcmask 156800   ;;  %vm1583_vm9 = vcmask 25600  }
  0x13   :  { %vm1611_vm13 = vcmask 58368   ;;  %vm1619_vm14 = vcmask 7168   ;;  %vm1633_vm15 = vcmask 15360  }
  0x14   :  { %1758 = vmatpush3.bf16.msra.mxu1 %v1916_v2  ;;  %1788 = vmatpush3.bf16.msra.mxu0 %v2143_v8 }
  0x15   :  { %1763 = vmatprep.subr.bf16.mxu1 %v2089_v0  ;;  %1799 = vmatprep.subr.bf16.mxu0 %v2089_v0 }
  0x17   :  { %1760 = vmatmul.mubr.msk.bf16.vlgmr.msra.gmra.mxu1 %vm78_vm1, %v61_v4 }
  0x18   :  { %1764 = vmatpush3.bf16.msra.mxu1 %v1917_v5  ;;  %1767 = vmatprep.mubr.msk.bf16.mxu1 %vm2090_vm0, %v2089_v0 }
  0x19   :  { %1765 = vmatprep.subr.bf16.mxu1 %v2089_v0 }
  0x1c   :  { %1766 = vmatpush3.bf16.msra.mxu1 %v1918_v6 }
  0x1d   :  { %1771 = vmatprep.subr.bf16.mxu1 %v2089_v0 }
  0x83   :  { %v185_v17 = vpop.permute.xlu0 %184 }
  0x84   :  { %v251_v36 = vpop.permute.xlu1 %250 }
  0xd7   :  { %v116_v10 = vpop.f32.mrf.mxu1 }
  0xd8   :  { %v117_v11 = vadd.f32 %v1647_v9, %v116_v10 }
  0xd9   :  { %v1761_v12 = vpop.f32.mrf.mxu1 }
  0xda   :  { %v122_v13 = vmax.f32 %v117_v11, 0.0 }
  0xdb   :  { %v119_v14 = vpop.f32.mrf.mxu1 }
  0xdc   :  { %v123_v15 = vpack.c.bf16 %v122_v13, %v122_v13 }
  0xdd   :  { %v1762_v16 = vpop.f32.mrf.mxu1 }
  0xde   :  { %1768 = vmatmul.mubr.msk.bf16.vlgmr.msra.gmra.mxu1 %vm78_vm1, %v123_v15 }
  0xdf   :  { %1772 = vmatpush3.bf16.msra.mxu1 %v2139_v7  ;;  %1775 = vmatprep.mubr.msk.bf16.mxu1 %vm2090_vm0, %v2089_v0 }
  0xe0   :  { %1773 = vmatprep.subr.bf16.mxu1 %v2089_v0 }
  0xe3   :  { %1774 = vmatpush3.bf16.msra.mxu1 %v2143_v8 }
  0xe4   :  { %1779 = vmatprep.subr.bf16.mxu1 %v2089_v0 }
  0xe6   :  { %1776 = vmatmul.mubr.msk.bf16.vlgmr.msra.gmra.mxu1 %vm78_vm1, %v185_v17 }
  0xe7   :  { %1781 = vmatprep.mubr.msk.bf16.mxu1 %vm2090_vm0, %v2089_v0  ;;  %1780 = vmatpush3.bf16.msra.mxu1 %v2173_v40 }
  0xe8   :  { %1793 = vmatprep.subr.bf16.mxu1 %v2089_v0 }
 0x19e   :  { %v177_v18 = vpop.f32.mrf.mxu1 }
 0x19f   :  { %v2165_v23 = vadd.f32 %v1651_v20, %v177_v18 }
 0x1a0   :  { %v1769_v19 = vpop.f32.mrf.mxu1 }
 0x1a2   :  { %v180_v21 = vpop.f32.mrf.mxu1 }
 0x1a4   :  { %v1770_v22 = vpop.f32.mrf.mxu1 }
 0x1a6   :  { %v235_v24 = vpop.f32.mrf.mxu1 }
 0x1a7   :  { %v241_v25 = vadd.f32 %v235_v24, %v2165_v23 }
 0x1a8   :  { %v1777_v26 = vpop.f32.mrf.mxu1 }
 0x1a9   :  { %1930 = vtanh.f32 %v241_v25  ;;  %v1658_v30 = vmul.f32 -1.442695, %v241_v25 }
 0x1aa   :  { %v238_v27 = vpop.f32.mrf.mxu1 }
 0x1ab   :  { %1932 = vpow2.f32 %v1658_v30 }
 0x1ac   :  { %v1778_v28 = vpop.f32.mrf.mxu1 }
 0x1b6   :  { %v1931_v29 = vpop.eup %1930 }
 0x1b7   :  { %255 = vrot.lane.b32.xlu0 %v1931_v29, %s2091_s0 }
 0x1b8   :  { %v1933_v31 = vpop.eup %1932 }
 0x1b9   :  { %v245_v32 = vadd.f32 1.0, %v1933_v31 }
 0x1bb   :  { %1934 = vrcp.f32 %v245_v32 }
 0x1c8   :  { %v1935_v33 = vpop.eup %1934 }
 0x1c9   :  { %v253_v37 = vmul.f32 %v1935_v33, %v251_v36 }
 0x229   :  { %v256_v34 = vpop.permute.xlu0 %255 }
 0x22a   :  { %v258_v35 = vmul.f32 %v1935_v33, %v256_v34 }
 0x22c   :  { %260 = vrot.lane.b32.xlu1 %v258_v35, %s2093_s23 }
 0x29e   :  { %v261_v38 = vpop.permute.xlu1 %260 }
 0x29f   :  { %v2170_v39 = vadd.f32 %v261_v38, %v253_v37 }
 0x2a1   :  { %1936 = vtanh.f32 %v2170_v39 }
 0x2ae   :  { %v1937_v41 = vpop.eup %1936 }
 0x2af   :  { %266 = vrot.lane.b32.xlu0 %v1937_v41, %s2094_s24 }
 0x2b3   :  { %275 = vrot.lane.b32.xlu0 %v1659_v42, %s2087_s12 }
 0x321   :  { %v267_v43 = vpop.permute.xlu0 %266 }
 0x322   :  { %v269_v44 = vmul.f32 %v1935_v33, %v267_v43 }
 0x324   :  { %v279_v45 = vpack.c.bf16 %v269_v44, %v269_v44 }
 0x325   :  { %v2189_v51 = vpop.permute.xlu0 %275 }
 0x326   :  { %281 = vrot.lane.b32.xlu1 %v279_v45, %s2092_s18  ;;  %v278_v52 = vadd.f32 %v2189_v51, %v235_v24 }
 0x398   :  { %v282_v46 = vpop.permute.xlu1 %281 }
 0x399   :  { %1782 = vmatmul.mubr.msk.bf16.vlgmr.msra.gmra.mxu1 %vm289_vm2, %v282_v46 }
 0x39a   :  { %1794 = vmatpush3.bf16.msra.mxu1 %v2173_v40  ;;  %1795 = vmatprep.mubr.msk.bf16.mxu1 %vm2090_vm0, %v2089_v0 }
 0x39b   :  { %1807 = vmatprep.subr.bf16.mxu1 %v2089_v0 }
 0x459   :  { %v327_v47 = vpop.f32.mrf.mxu1 }
 0x45a   :  { %334 = vrot.lane.b32.xlu1 %v327_v47, %s2087_s12 }
 0x45b   :  { %v1783_v48 = vpop.f32.mrf.mxu1 }
 0x45d   :  { %v330_v49 = vpop.f32.mrf.mxu1 }
 0x45f   :  { %v1784_v50 = vpop.f32.mrf.mxu1 }
 0x4cc   :  { %v335_v53 = vpop.permute.xlu1 %334 }
 0x4cd   :  { %v337_v54 = vadd.f32 %v335_v53, %v278_v52 }
 0x4cf   :  { %1938 = vtanh.f32 %v337_v54  ;;  %v1662_v56 = vmul.f32 -1.442695, %v337_v54 }
 0x4d1   :  { %1940 = vpow2.f32 %v1662_v56 }
 0x4dc   :  { %v1939_v55 = vpop.eup %1938 }
 0x4dd   :  { %347 = vrot.lane.b32.xlu0 %v1939_v55, %s2091_s0 }
 0x4de   :  { %v1941_v57 = vpop.eup %1940 }
 0x4df   :  { %v341_v58 = vadd.f32 1.0, %v1941_v57 }
 0x4e1   :  { %1942 = vrcp.f32 %v341_v58 }
 0x4ee   :  { %v1943_v59 = vpop.eup %1942 }
 0x4ef   :  { %v345_v62 = vmul.f32 %v1943_v59, %v2127_v3 }
 0x54f   :  { %v348_v60 = vpop.permute.xlu0 %347 }
 0x550   :  { %v350_v61 = vmul.f32 %v1943_v59, %v348_v60 }
 0x552   :  { %352 = vrot.lane.b32.xlu1 %v350_v61, %s2093_s23 }
 0x556   :  { %363 = vrot.lane.b32.xlu1 %v269_v44, %s2092_s18 }
 0x5c4   :  { %v353_v63 = vpop.permute.xlu1 %352 }
 0x5c5   :  { %v2196_v1 = vadd.f32 %v353_v63, %v345_v62 }
 0x5c7   :  { %1944 = vtanh.f32 %v2196_v1 }
 0x5c8   :  { %v364_v6 = vpop.permute.xlu1 %363 }
 0x5d4   :  { %v1945_v2 = vpop.eup %1944 }
 0x5d5   :  { %358 = vrot.lane.b32.xlu0 %v1945_v2, %s2094_s24 }
 0x647   :  { %v359_v4 = vpop.permute.xlu0 %358 }
 0x648   :  { %v2200_v5 = vmul.f32 %v1943_v59, %v359_v4 }
 0x64a   :  { %367 = vrot.lane.b32.xlu0 %v2200_v5, %s2094_s24 }
 0x6bc   :  { %v368_v9 = vpop.permute.xlu0 %367 }
 0x6bd   :  { %v370_v10 = vsel %vm289_vm2, %v364_v6, %v368_v9 }
 0x6be   :  { %v371_v11 = vpack.c.bf16 %v370_v10, %v370_v10 }
 0x6c0   :  { %1790 = vmatmul.mubr.msk.bf16.vlgmr.msra.gmra.mxu0 %vm78_vm1, %v371_v11 }
 0x6c1   :  { %1800 = vmatpush3.bf16.msra.mxu0 %v2139_v7  ;;  %1803 = vmatprep.mubr.msk.bf16.mxu0 %vm2090_vm0, %v2089_v0 }
 0x6c2   :  { %1801 = vmatprep.subr.bf16.mxu0 %v2089_v0 }
 0x6c5   :  { %1802 = vmatpush3.bf16.msra.mxu0 %v2143_v8 }
 0x6c6   :  { %1813 = vmatprep.subr.bf16.mxu0 %v2089_v0 }
 0x780   :  { %v409_v3 = vpop.f32.mrf.mxu0 }
 0x781   :  { %v415_v12 = vadd.f32 %v409_v3, %v2165_v23  ;;  %v440_v36 = vadd.f32 %v409_v3, %v2189_v51 }
 0x782   :  { %v1791_v13 = vpop.f32.mrf.mxu0 }
 0x783   :  { %1946 = vtanh.f32 %v415_v12  ;;  %v1664_v17 = vmul.f32 -1.442695, %v415_v12 }
 0x784   :  { %v412_v14 = vpop.f32.mrf.mxu0 }
 0x785   :  { %1948 = vpow2.f32 %v1664_v17 }
 0x786   :  { %v1792_v15 = vpop.f32.mrf.mxu0 }
 0x790   :  { %v1947_v16 = vpop.eup %1946 }
 0x791   :  { %425 = vrot.lane.b32.xlu1 %v1947_v16, %s2091_s0 }
 0x792   :  { %v1949_v18 = vpop.eup %1948 }
 0x793   :  { %v419_v19 = vadd.f32 1.0, %v1949_v18 }
 0x795   :  { %1950 = vrcp.f32 %v419_v19 }
 0x7a2   :  { %v1951_v20 = vpop.eup %1950 }
 0x7a3   :  { %v423_v24 = vmul.f32 %v1951_v20, %v2170_v39 }
 0x803   :  { %v426_v21 = vpop.permute.xlu1 %425 }
 0x804   :  { %v428_v22 = vmul.f32 %v1951_v20, %v426_v21 }
 0x806   :  { %430 = vrot.lane.b32.xlu0 %v428_v22, %s2093_s23 }
 0x878   :  { %v431_v25 = vpop.permute.xlu0 %430 }
 0x879   :  { %v2216_v26 = vadd.f32 %v431_v25, %v423_v24 }
 0x87b   :  { %1952 = vtanh.f32 %v2216_v26 }
 0x888   :  { %v1953_v27 = vpop.eup %1952 }
 0x889   :  { %436 = vrot.lane.b32.xlu1 %v1953_v27, %s2094_s24 }
 0x8fb   :  { %v437_v28 = vpop.permute.xlu1 %436 }
 0x8fc   :  { %v439_v29 = vmul.f32 %v1951_v20, %v437_v28 }
 0x8fe   :  { %v441_v30 = vpack.c.bf16 %v439_v29, %v439_v29 }
 0x900   :  { %443 = vrot.lane.b32.xlu0 %v441_v30, %s2092_s18 }
 0x972   :  { %v444_v31 = vpop.permute.xlu0 %443 }
 0x973   :  { %1796 = vmatmul.mubr.msk.bf16.vlgmr.msra.gmra.mxu1 %vm289_vm2, %v444_v31 }
 0x974   :  { %1808 = vmatpush3.bf16.msra.mxu1 %v2173_v40  ;;  %1809 = vmatprep.mubr.msk.bf16.mxu1 %vm2090_vm0, %v2089_v0 }
 0x975   :  { %1821 = vmatprep.subr.bf16.mxu1 %v2089_v0 }
 0xa33   :  { %v482_v32 = vpop.f32.mrf.mxu1 }
 0xa34   :  { %489 = vrot.lane.b32.xlu1 %v482_v32, %s2087_s12 }
 0xa35   :  { %v1797_v33 = vpop.f32.mrf.mxu1 }
 0xa37   :  { %v485_v34 = vpop.f32.mrf.mxu1 }
 0xa39   :  { %v1798_v35 = vpop.f32.mrf.mxu1 }
 0xaa6   :  { %v490_v37 = vpop.permute.xlu1 %489 }
 0xaa7   :  { %v492_v38 = vadd.f32 %v490_v37, %v440_v36 }
 0xaa9   :  { %1954 = vtanh.f32 %v492_v38  ;;  %v1666_v41 = vmul.f32 -1.442695, %v492_v38 }
 0xaab   :  { %1956 = vpow2.f32 %v1666_v41 }
 0xab6   :  { %v1955_v39 = vpop.eup %1954 }
 0xab7   :  { %502 = vrot.lane.b32.xlu0 %v1955_v39, %s2091_s0 }
 0xab8   :  { %v1957_v42 = vpop.eup %1956 }
 0xab9   :  { %v496_v43 = vadd.f32 1.0, %v1957_v42 }
 0xabb   :  { %1958 = vrcp.f32 %v496_v43 }
 0xac8   :  { %v1959_v44 = vpop.eup %1958 }
 0xac9   :  { %v500_v47 = vmul.f32 %v1959_v44, %v2196_v1 }
 0xb29   :  { %v503_v45 = vpop.permute.xlu0 %502 }
 0xb2a   :  { %v505_v46 = vmul.f32 %v1959_v44, %v503_v45 }
 0xb2c   :  { %507 = vrot.lane.b32.xlu1 %v505_v46, %s2093_s23 }
 0xb30   :  { %518 = vrot.lane.b32.xlu1 %v439_v29, %s2092_s18 }
 0xb9e   :  { %v508_v48 = vpop.permute.xlu1 %507 }
 0xb9f   :  { %v2232_v49 = vadd.f32 %v508_v48, %v500_v47 }
 0xba1   :  { %1960 = vtanh.f32 %v2232_v49 }
 0xba2   :  { %v519_v54 = vpop.permute.xlu1 %518 }
 0xbae   :  { %v1961_v50 = vpop.eup %1960 }
 0xbaf   :  { %513 = vrot.lane.b32.xlu0 %v1961_v50, %s2094_s24 }
 0xc21   :  { %v514_v52 = vpop.permute.xlu0 %513 }
 0xc22   :  { %v516_v53 = vmul.f32 %v1959_v44, %v514_v52 }
 0xc24   :  { %522 = vrot.lane.b32.xlu0 %v516_v53, %s2094_s24 }
 0xc96   :  { %v2237_v55 = vpop.permute.xlu0 %522 }
 0xc97   :  { %v525_v56 = vsel %vm289_vm2, %v519_v54, %v2237_v55 }
 0xc98   :  { %v526_v57 = vpack.c.bf16 %v525_v56, %v525_v56 }
 0xc9a   :  { %1804 = vmatmul.mubr.msk.bf16.vlgmr.msra.gmra.mxu0 %vm78_vm1, %v526_v57 }
 0xc9b   :  { %1814 = vmatpush3.bf16.msra.mxu0 %v2139_v7  ;;  %1817 = vmatprep.mubr.msk.bf16.mxu0 %vm2090_vm0, %v2089_v0 }
 0xc9c   :  { %1815 = vmatprep.subr.bf16.mxu0 %v2089_v0 }
 0xc9f   :  { %1816 = vmatpush3.bf16.msra.mxu0 %v2143_v8 }
 0xca0   :  { %1827 = vmatprep.subr.bf16.mxu0 %v2089_v0 }
 0xd5a   :  { %v564_v58 = vpop.f32.mrf.mxu0 }
 0xd5b   :  { %v570_v59 = vadd.f32 %v564_v58, %v2165_v23  ;;  %v595_v22 = vadd.f32 %v564_v58, %v2189_v51 }
 0xd5c   :  { %v1805_v60 = vpop.f32.mrf.mxu0 }
 0xd5d   :  { %1962 = vtanh.f32 %v570_v59  ;;  %v1668_v1 = vmul.f32 -1.442695, %v570_v59 }
 0xd5e   :  { %v567_v61 = vpop.f32.mrf.mxu0 }
 0xd5f   :  { %1964 = vpow2.f32 %v1668_v1 }
 0xd60   :  { %v1806_v62 = vpop.f32.mrf.mxu0 }
 0xd6a   :  { %v1963_v63 = vpop.eup %1962 }
 0xd6b   :  { %580 = vrot.lane.b32.xlu1 %v1963_v63, %s2091_s0 }
 0xd6c   :  { %v1965_v2 = vpop.eup %1964 }
 0xd6d   :  { %v574_v4 = vadd.f32 1.0, %v1965_v2 }
 0xd6f   :  { %1966 = vrcp.f32 %v574_v4 }
 0xd7c   :  { %v1967_v6 = vpop.eup %1966 }
 0xd7d   :  { %v578_v11 = vmul.f32 %v1967_v6, %v2216_v26 }
 0xddd   :  { %v581_v9 = vpop.permute.xlu1 %580 }
 0xdde   :  { %v583_v10 = vmul.f32 %v1967_v6, %v581_v9 }
 0xde0   :  { %585 = vrot.lane.b32.xlu0 %v583_v10, %s2093_s23 }
 0xe52   :  { %v586_v3 = vpop.permute.xlu0 %585 }
 0xe53   :  { %v2252_v12 = vadd.f32 %v586_v3, %v578_v11 }
 0xe55   :  { %1968 = vtanh.f32 %v2252_v12 }
 0xe62   :  { %v1969_v13 = vpop.eup %1968 }
 0xe63   :  { %591 = vrot.lane.b32.xlu1 %v1969_v13, %s2094_s24 }
 0xed5   :  { %v592_v14 = vpop.permute.xlu1 %591 }
 0xed6   :  { %v594_v15 = vmul.f32 %v1967_v6, %v592_v14 }
 0xed8   :  { %v596_v16 = vpack.c.bf16 %v594_v15, %v594_v15 }
 0xeda   :  { %598 = vrot.lane.b32.xlu0 %v596_v16, %s2092_s18 }
 0xf4c   :  { %v599_v17 = vpop.permute.xlu0 %598 }
 0xf4d   :  { %1810 = vmatmul.mubr.msk.bf16.vlgmr.msra.gmra.mxu1 %vm289_vm2, %v599_v17 }
 0xf4e   :  { %1822 = vmatpush3.bf16.msra.mxu1 %v2173_v40  ;;  %1823 = vmatprep.mubr.msk.bf16.mxu1 %vm2090_vm0, %v2089_v0 }
 0xf4f   :  { %1835 = vmatprep.subr.bf16.mxu1 %v2089_v0 }
0x100d   :  { %v637_v18 = vpop.f32.mrf.mxu1 }
0x100e   :  { %644 = vrot.lane.b32.xlu1 %v637_v18, %s2087_s12 }
0x100f   :  { %v1811_v19 = vpop.f32.mrf.mxu1 }
0x1011   :  { %v640_v20 = vpop.f32.mrf.mxu1 }
0x1013   :  { %v1812_v21 = vpop.f32.mrf.mxu1 }
0x1080   :  { %v645_v24 = vpop.permute.xlu1 %644 }
0x1081   :  { %v647_v25 = vadd.f32 %v645_v24, %v595_v22 }
0x1083   :  { %1970 = vtanh.f32 %v647_v25  ;;  %v1670_v27 = vmul.f32 -1.442695, %v647_v25 }
0x1085   :  { %1972 = vpow2.f32 %v1670_v27 }
0x1090   :  { %v1971_v26 = vpop.eup %1970 }
0x1091   :  { %657 = vrot.lane.b32.xlu0 %v1971_v26, %s2091_s0 }
0x1092   :  { %v1973_v28 = vpop.eup %1972 }
0x1093   :  { %v651_v29 = vadd.f32 1.0, %v1973_v28 }
0x1095   :  { %1974 = vrcp.f32 %v651_v29 }
0x10a2   :  { %v1975_v30 = vpop.eup %1974 }
0x10a3   :  { %v655_v33 = vmul.f32 %v1975_v30, %v2232_v49 }
0x1103   :  { %v658_v31 = vpop.permute.xlu0 %657 }
0x1104   :  { %v660_v32 = vmul.f32 %v1975_v30, %v658_v31 }
0x1106   :  { %662 = vrot.lane.b32.xlu1 %v660_v32, %s2093_s23 }
0x110a   :  { %673 = vrot.lane.b32.xlu1 %v594_v15, %s2092_s18 }
0x1178   :  { %v663_v34 = vpop.permute.xlu1 %662 }
0x1179   :  { %v2268_v35 = vadd.f32 %v663_v34, %v655_v33 }
0x117b   :  { %1976 = vtanh.f32 %v2268_v35 }
0x117c   :  { %v674_v39 = vpop.permute.xlu1 %673 }
0x1188   :  { %v1977_v36 = vpop.eup %1976 }
0x1189   :  { %668 = vrot.lane.b32.xlu0 %v1977_v36, %s2094_s24 }
0x11fb   :  { %v669_v37 = vpop.permute.xlu0 %668 }
0x11fc   :  { %v2272_v38 = vmul.f32 %v1975_v30, %v669_v37 }
0x11fe   :  { %677 = vrot.lane.b32.xlu0 %v2272_v38, %s2094_s24 }
0x1270   :  { %v678_v41 = vpop.permute.xlu0 %677 }
0x1271   :  { %v680_v42 = vsel %vm289_vm2, %v674_v39, %v678_v41 }
0x1272   :  { %v681_v43 = vpack.c.bf16 %v680_v42, %v680_v42 }
0x1274   :  { %1818 = vmatmul.mubr.msk.bf16.vlgmr.msra.gmra.mxu0 %vm78_vm1, %v681_v43 }
0x1275   :  { %1828 = vmatpush3.bf16.msra.mxu0 %v2139_v7  ;;  %1831 = vmatprep.mubr.msk.bf16.mxu0 %vm2090_vm0, %v2089_v0 }
0x1276   :  { %1829 = vmatprep.subr.bf16.mxu0 %v2089_v0 }
0x1279   :  { %1830 = vmatpush3.bf16.msra.mxu0 %v2143_v8 }
0x127a   :  { %1841 = vmatprep.subr.bf16.mxu0 %v2089_v0 }
0x1334   :  { %v719_v44 = vpop.f32.mrf.mxu0 }
0x1335   :  { %v725_v45 = vadd.f32 %v719_v44, %v2165_v23  ;;  %v750_v11 = vadd.f32 %v719_v44, %v2189_v51 }
0x1336   :  { %v1819_v46 = vpop.f32.mrf.mxu0 }
0x1337   :  { %1978 = vtanh.f32 %v725_v45  ;;  %v1672_v50 = vmul.f32 -1.442695, %v725_v45 }
0x1338   :  { %v722_v47 = vpop.f32.mrf.mxu0 }
0x1339   :  { %1980 = vpow2.f32 %v1672_v50 }
0x133a   :  { %v1820_v48 = vpop.f32.mrf.mxu0 }
0x1344   :  { %v1979_v49 = vpop.eup %1978 }
0x1345   :  { %735 = vrot.lane.b32.xlu1 %v1979_v49, %s2091_s0 }
0x1346   :  { %v1981_v52 = vpop.eup %1980 }
0x1347   :  { %v729_v53 = vadd.f32 1.0, %v1981_v52 }
0x1349   :  { %1982 = vrcp.f32 %v729_v53 }
0x1356   :  { %v1983_v54 = vpop.eup %1982 }
0x1357   :  { %v733_v58 = vmul.f32 %v1983_v54, %v2252_v12 }
0x13b7   :  { %v736_v56 = vpop.permute.xlu1 %735 }
0x13b8   :  { %v738_v57 = vmul.f32 %v1983_v54, %v736_v56 }
0x13ba   :  { %740 = vrot.lane.b32.xlu0 %v738_v57, %s2093_s23 }
0x142c   :  { %v741_v59 = vpop.permute.xlu0 %740 }
0x142d   :  { %v2288_v60 = vadd.f32 %v741_v59, %v733_v58 }
0x142f   :  { %1984 = vtanh.f32 %v2288_v60 }
0x143c   :  { %v1985_v61 = vpop.eup %1984 }
0x143d   :  { %746 = vrot.lane.b32.xlu1 %v1985_v61, %s2094_s24 }
0x14af   :  { %v747_v62 = vpop.permute.xlu1 %746 }
0x14b0   :  { %v749_v63 = vmul.f32 %v1983_v54, %v747_v62 }
0x14b2   :  { %v751_v1 = vpack.c.bf16 %v749_v63, %v749_v63 }
0x14b4   :  { %753 = vrot.lane.b32.xlu0 %v751_v1, %s2092_s18 }
0x1526   :  { %v754_v2 = vpop.permute.xlu0 %753 }
0x1527   :  { %1824 = vmatmul.mubr.msk.bf16.vlgmr.msra.gmra.mxu1 %vm289_vm2, %v754_v2 }
0x1528   :  { %1836 = vmatpush3.bf16.msra.mxu1 %v2173_v40  ;;  %1837 = vmatprep.mubr.msk.bf16.mxu1 %vm2090_vm0, %v2089_v0 }
0x1529   :  { %1849 = vmatprep.subr.bf16.mxu1 %v2089_v0 }
0x15e7   :  { %v792_v4 = vpop.f32.mrf.mxu1 }
0x15e8   :  { %799 = vrot.lane.b32.xlu1 %v792_v4, %s2087_s12 }
0x15e9   :  { %v1825_v6 = vpop.f32.mrf.mxu1 }
0x15eb   :  { %v795_v9 = vpop.f32.mrf.mxu1 }
0x15ed   :  { %v1826_v10 = vpop.f32.mrf.mxu1 }
0x165a   :  { %v800_v3 = vpop.permute.xlu1 %799 }
0x165b   :  { %v802_v12 = vadd.f32 %v800_v3, %v750_v11 }
0x165d   :  { %1986 = vtanh.f32 %v802_v12  ;;  %v1674_v14 = vmul.f32 -1.442695, %v802_v12 }
0x165f   :  { %1988 = vpow2.f32 %v1674_v14 }
0x166a   :  { %v1987_v13 = vpop.eup %1986 }
0x166b   :  { %812 = vrot.lane.b32.xlu0 %v1987_v13, %s2091_s0 }
0x166c   :  { %v1989_v15 = vpop.eup %1988 }
0x166d   :  { %v806_v16 = vadd.f32 1.0, %v1989_v15 }
0x166f   :  { %1990 = vrcp.f32 %v806_v16 }
0x167c   :  { %v1991_v17 = vpop.eup %1990 }
0x167d   :  { %v810_v20 = vmul.f32 %v1991_v17, %v2268_v35 }
0x16dd   :  { %v813_v18 = vpop.permute.xlu0 %812 }
0x16de   :  { %v815_v19 = vmul.f32 %v1991_v17, %v813_v18 }
0x16e0   :  { %817 = vrot.lane.b32.xlu1 %v815_v19, %s2093_s23 }
0x16e4   :  { %828 = vrot.lane.b32.xlu1 %v749_v63, %s2092_s18 }
0x1752   :  { %v818_v21 = vpop.permute.xlu1 %817 }
0x1753   :  { %v2304_v22 = vadd.f32 %v818_v21, %v810_v20 }
0x1755   :  { %1992 = vtanh.f32 %v2304_v22 }
0x1756   :  { %v829_v27 = vpop.permute.xlu1 %828 }
0x1762   :  { %v1993_v24 = vpop.eup %1992 }
0x1763   :  { %823 = vrot.lane.b32.xlu0 %v1993_v24, %s2094_s24 }
0x17d5   :  { %v824_v25 = vpop.permute.xlu0 %823 }
0x17d6   :  { %v2308_v26 = vmul.f32 %v1991_v17, %v824_v25 }
0x17d8   :  { %832 = vrot.lane.b32.xlu0 %v2308_v26, %s2094_s24 }
0x184a   :  { %v833_v28 = vpop.permute.xlu0 %832 }
0x184b   :  { %v835_v29 = vsel %vm289_vm2, %v829_v27, %v833_v28 }
0x184c   :  { %v836_v30 = vpack.c.bf16 %v835_v29, %v835_v29 }
0x184e   :  { %1832 = vmatmul.mubr.msk.bf16.vlgmr.msra.gmra.mxu0 %vm78_vm1, %v836_v30 }
0x184f   :  { %1842 = vmatpush3.bf16.msra.mxu0 %v2139_v7  ;;  %1845 = vmatprep.mubr.msk.bf16.mxu0 %vm2090_vm0, %v2089_v0 }
0x1850   :  { %1843 = vmatprep.subr.bf16.mxu0 %v2089_v0 }
0x1853   :  { %1844 = vmatpush3.bf16.msra.mxu0 %v2143_v8 }
0x1854   :  { %1855 = vmatprep.subr.bf16.mxu0 %v2089_v0 }
0x190e   :  { %v874_v31 = vpop.f32.mrf.mxu0 }
0x190f   :  { %v880_v32 = vadd.f32 %v874_v31, %v2165_v23  ;;  %v905_v59 = vadd.f32 %v874_v31, %v2189_v51 }
0x1910   :  { %v1833_v33 = vpop.f32.mrf.mxu0 }
0x1911   :  { %1994 = vtanh.f32 %v880_v32  ;;  %v1676_v37 = vmul.f32 -1.442695, %v880_v32 }
0x1912   :  { %v877_v34 = vpop.f32.mrf.mxu0 }
0x1913   :  { %1996 = vpow2.f32 %v1676_v37 }
0x1914   :  { %v1834_v35 = vpop.f32.mrf.mxu0 }
0x191e   :  { %v1995_v36 = vpop.eup %1994 }
0x191f   :  { %890 = vrot.lane.b32.xlu1 %v1995_v36, %s2091_s0 }
0x1920   :  { %v1997_v39 = vpop.eup %1996 }
0x1921   :  { %v884_v41 = vadd.f32 1.0, %v1997_v39 }
0x1923   :  { %1998 = vrcp.f32 %v884_v41 }
0x1930   :  { %v1999_v42 = vpop.eup %1998 }
0x1931   :  { %v888_v45 = vmul.f32 %v1999_v42, %v2288_v60 }
0x1991   :  { %v891_v43 = vpop.permute.xlu1 %890 }
0x1992   :  { %v893_v44 = vmul.f32 %v1999_v42, %v891_v43 }
0x1994   :  { %895 = vrot.lane.b32.xlu0 %v893_v44, %s2093_s23 }
0x1a06   :  { %v896_v46 = vpop.permute.xlu0 %895 }
0x1a07   :  { %v2324_v47 = vadd.f32 %v896_v46, %v888_v45 }
0x1a09   :  { %2000 = vtanh.f32 %v2324_v47 }
0x1a16   :  { %v2001_v48 = vpop.eup %2000 }
0x1a17   :  { %901 = vrot.lane.b32.xlu1 %v2001_v48, %s2094_s24 }
0x1a89   :  { %v902_v49 = vpop.permute.xlu1 %901 }
0x1a8a   :  { %v904_v50 = vmul.f32 %v1999_v42, %v902_v49 }
0x1a8c   :  { %v906_v52 = vpack.c.bf16 %v904_v50, %v904_v50 }
0x1a8e   :  { %908 = vrot.lane.b32.xlu0 %v906_v52, %s2092_s18 }
0x1b00   :  { %v909_v53 = vpop.permute.xlu0 %908 }
0x1b01   :  { %1838 = vmatmul.mubr.msk.bf16.vlgmr.msra.gmra.mxu1 %vm289_vm2, %v909_v53 }
0x1b02   :  { %1850 = vmatpush3.bf16.msra.mxu1 %v2173_v40  ;;  %1851 = vmatprep.mubr.msk.bf16.mxu1 %vm2090_vm0, %v2089_v0 }
0x1b03   :  { %1863 = vmatprep.subr.bf16.mxu1 %v2089_v0 }
0x1bc1   :  { %v947_v54 = vpop.f32.mrf.mxu1 }
0x1bc2   :  { %954 = vrot.lane.b32.xlu1 %v947_v54, %s2087_s12 }
0x1bc3   :  { %v1839_v56 = vpop.f32.mrf.mxu1 }
0x1bc5   :  { %v950_v57 = vpop.f32.mrf.mxu1 }
0x1bc7   :  { %v1840_v58 = vpop.f32.mrf.mxu1 }
0x1c34   :  { %v955_v60 = vpop.permute.xlu1 %954 }
0x1c35   :  { %v957_v61 = vadd.f32 %v955_v60, %v905_v59 }
0x1c37   :  { %2002 = vtanh.f32 %v957_v61  ;;  %v1678_v63 = vmul.f32 -1.442695, %v957_v61 }
0x1c39   :  { %2004 = vpow2.f32 %v1678_v63 }
0x1c44   :  { %v2003_v62 = vpop.eup %2002 }
0x1c45   :  { %967 = vrot.lane.b32.xlu0 %v2003_v62, %s2091_s0 }
0x1c46   :  { %v2005_v1 = vpop.eup %2004 }
0x1c47   :  { %v961_v2 = vadd.f32 1.0, %v2005_v1 }
0x1c49   :  { %2006 = vrcp.f32 %v961_v2 }
0x1c56   :  { %v2007_v4 = vpop.eup %2006 }
0x1c57   :  { %v965_v10 = vmul.f32 %v2007_v4, %v2304_v22 }
0x1cb7   :  { %v968_v6 = vpop.permute.xlu0 %967 }
0x1cb8   :  { %v970_v9 = vmul.f32 %v2007_v4, %v968_v6 }
0x1cba   :  { %972 = vrot.lane.b32.xlu1 %v970_v9, %s2093_s23 }
0x1cbe   :  { %983 = vrot.lane.b32.xlu1 %v904_v50, %s2092_s18 }
0x1d2c   :  { %v973_v11 = vpop.permute.xlu1 %972 }
0x1d2d   :  { %v2340_v3 = vadd.f32 %v973_v11, %v965_v10 }
0x1d2f   :  { %2008 = vtanh.f32 %v2340_v3 }
0x1d30   :  { %v984_v15 = vpop.permute.xlu1 %983 }
0x1d3c   :  { %v2009_v12 = vpop.eup %2008 }
0x1d3d   :  { %978 = vrot.lane.b32.xlu0 %v2009_v12, %s2094_s24 }
0x1daf   :  { %v979_v13 = vpop.permute.xlu0 %978 }
0x1db0   :  { %v2344_v14 = vmul.f32 %v2007_v4, %v979_v13 }
0x1db2   :  { %987 = vrot.lane.b32.xlu0 %v2344_v14, %s2094_s24 }
0x1e24   :  { %v988_v16 = vpop.permute.xlu0 %987 }
0x1e25   :  { %v990_v17 = vsel %vm289_vm2, %v984_v15, %v988_v16 }
0x1e26   :  { %v991_v18 = vpack.c.bf16 %v990_v17, %v990_v17 }
0x1e28   :  { %1846 = vmatmul.mubr.msk.bf16.vlgmr.msra.gmra.mxu0 %vm78_vm1, %v991_v18 }
0x1e29   :  { %1856 = vmatpush3.bf16.msra.mxu0 %v2139_v7  ;;  %1859 = vmatprep.mubr.msk.bf16.mxu0 %vm2090_vm0, %v2089_v0 }
0x1e2a   :  { %1857 = vmatprep.subr.bf16.mxu0 %v2089_v0 }
0x1e2d   :  { %1858 = vmatpush3.bf16.msra.mxu0 %v2143_v8 }
0x1e2e   :  { %1869 = vmatprep.subr.bf16.mxu0 %v2089_v0 }
0x1ee8   :  { %v1029_v19 = vpop.f32.mrf.mxu0 }
0x1ee9   :  { %v1035_v20 = vadd.f32 %v1029_v19, %v2165_v23 }
0x1eea   :  { %v1847_v21 = vpop.f32.mrf.mxu0 }
0x1eeb   :  { %2010 = vtanh.f32 %v1035_v20  ;;  %v1680_v27 = vmul.f32 -1.442695, %v1035_v20 }
0x1eec   :  { %v1032_v22 = vpop.f32.mrf.mxu0 }
0x1eed   :  { %2012 = vpow2.f32 %v1680_v27 }
0x1eee   :  { %v1848_v24 = vpop.f32.mrf.mxu0 }
0x1ef8   :  { %v2011_v25 = vpop.eup %2010 }
0x1ef9   :  { %1045 = vrot.lane.b32.xlu1 %v2011_v25, %s2091_s0 }
0x1efa   :  { %v2013_v28 = vpop.eup %2012 }
0x1efb   :  { %v1039_v29 = vadd.f32 1.0, %v2013_v28 }
0x1efd   :  { %2014 = vrcp.f32 %v1039_v29 }
0x1f0a   :  { %v2015_v30 = vpop.eup %2014 }
0x1f0b   :  { %v1043_v33 = vmul.f32 %v2015_v30, %v2324_v47  ;;  %v1060_v47 = vadd.f32 %v1029_v19, %v2189_v51 }
0x1f6b   :  { %v1046_v31 = vpop.permute.xlu1 %1045 }
0x1f6c   :  { %v1048_v32 = vmul.f32 %v2015_v30, %v1046_v31 }
0x1f6e   :  { %1050 = vrot.lane.b32.xlu0 %v1048_v32, %s2093_s23 }
0x1fe0   :  { %v1051_v34 = vpop.permute.xlu0 %1050 }
0x1fe1   :  { %v2360_v35 = vadd.f32 %v1051_v34, %v1043_v33 }
0x1fe3   :  { %2016 = vtanh.f32 %v2360_v35 }
0x1ff0   :  { %v2017_v36 = vpop.eup %2016 }
0x1ff1   :  { %1056 = vrot.lane.b32.xlu1 %v2017_v36, %s2094_s24 }
0x2063   :  { %v1057_v37 = vpop.permute.xlu1 %1056 }
0x2064   :  { %v1059_v39 = vmul.f32 %v2015_v30, %v1057_v37 }
0x2066   :  { %v1061_v41 = vpack.c.bf16 %v1059_v39, %v1059_v39 }
0x2068   :  { %1063 = vrot.lane.b32.xlu0 %v1061_v41, %s2092_s18 }
0x20da   :  { %v1064_v42 = vpop.permute.xlu0 %1063 }
0x20db   :  { %1852 = vmatmul.mubr.msk.bf16.vlgmr.msra.gmra.mxu1 %vm289_vm2, %v1064_v42 }
0x20dc   :  { %1864 = vmatpush3.bf16.msra.mxu1 %v2173_v40  ;;  %1865 = vmatprep.mubr.msk.bf16.mxu1 %vm2090_vm0, %v2089_v0 }
0x20dd   :  { %1877 = vmatprep.subr.bf16.mxu1 %v2089_v0 }
0x219b   :  { %v1102_v43 = vpop.f32.mrf.mxu1 }
0x219c   :  { %1109 = vrot.lane.b32.xlu1 %v1102_v43, %s2087_s12 }
0x219d   :  { %v1853_v44 = vpop.f32.mrf.mxu1 }
0x219f   :  { %v1105_v45 = vpop.f32.mrf.mxu1 }
0x21a1   :  { %v1854_v46 = vpop.f32.mrf.mxu1 }
0x220e   :  { %v1110_v48 = vpop.permute.xlu1 %1109 }
0x220f   :  { %v1112_v49 = vadd.f32 %v1110_v48, %v1060_v47 }
0x2211   :  { %2018 = vtanh.f32 %v1112_v49  ;;  %v1682_v52 = vmul.f32 -1.442695, %v1112_v49 }
0x2213   :  { %2020 = vpow2.f32 %v1682_v52 }
0x221e   :  { %v2019_v50 = vpop.eup %2018 }
0x221f   :  { %1122 = vrot.lane.b32.xlu0 %v2019_v50, %s2091_s0 }
0x2220   :  { %v2021_v53 = vpop.eup %2020 }
0x2221   :  { %v1116_v54 = vadd.f32 1.0, %v2021_v53 }
0x2223   :  { %2022 = vrcp.f32 %v1116_v54 }
0x2230   :  { %v2023_v56 = vpop.eup %2022 }
0x2231   :  { %v1120_v59 = vmul.f32 %v2023_v56, %v2340_v3 }
0x2291   :  { %v1123_v57 = vpop.permute.xlu0 %1122 }
0x2292   :  { %v1125_v58 = vmul.f32 %v2023_v56, %v1123_v57 }
0x2294   :  { %1127 = vrot.lane.b32.xlu1 %v1125_v58, %s2093_s23 }
0x2298   :  { %1138 = vrot.lane.b32.xlu1 %v1059_v39, %s2092_s18 }
0x2306   :  { %v1128_v60 = vpop.permute.xlu1 %1127 }
0x2307   :  { %v2376_v61 = vadd.f32 %v1128_v60, %v1120_v59 }
0x2309   :  { %2024 = vtanh.f32 %v2376_v61 }
0x230a   :  { %v1139_v2 = vpop.permute.xlu1 %1138 }
0x2316   :  { %v2025_v62 = vpop.eup %2024 }
0x2317   :  { %1133 = vrot.lane.b32.xlu0 %v2025_v62, %s2094_s24 }
0x2389   :  { %v1134_v63 = vpop.permute.xlu0 %1133 }
0x238a   :  { %v2380_v1 = vmul.f32 %v2023_v56, %v1134_v63 }
0x238c   :  { %1142 = vrot.lane.b32.xlu0 %v2380_v1, %s2094_s24 }
0x23fe   :  { %v1143_v4 = vpop.permute.xlu0 %1142 }
0x23ff   :  { %v1145_v6 = vsel %vm289_vm2, %v1139_v2, %v1143_v4 }
0x2400   :  { %v1146_v9 = vpack.c.bf16 %v1145_v6, %v1145_v6 }
0x2402   :  { %1860 = vmatmul.mubr.msk.bf16.vlgmr.msra.gmra.mxu0 %vm78_vm1, %v1146_v9 }
0x2403   :  { %1870 = vmatpush3.bf16.msra.mxu0 %v2139_v7  ;;  %1873 = vmatprep.mubr.msk.bf16.mxu0 %vm2090_vm0, %v2089_v0 }
0x2404   :  { %1871 = vmatprep.subr.bf16.mxu0 %v2089_v0 }
0x2407   :  { %1872 = vmatpush3.bf16.msra.mxu0 %v2143_v8 }
0x2408   :  { %1883 = vmatprep.subr.bf16.mxu0 %v2089_v0 }
0x24c2   :  { %v1184_v10 = vpop.f32.mrf.mxu0 }
0x24c3   :  { %v1190_v11 = vadd.f32 %v1184_v10, %v2165_v23  ;;  %v1215_v34 = vadd.f32 %v1184_v10, %v2189_v51 }
0x24c4   :  { %v1861_v3 = vpop.f32.mrf.mxu0 }
0x24c5   :  { %2026 = vtanh.f32 %v1190_v11  ;;  %v1684_v7 = vmul.f32 -1.442695, %v1190_v11 }
0x24c6   :  { %v1187_v12 = vpop.f32.mrf.mxu0 }
0x24c7   :  { %2028 = vpow2.f32 %v1684_v7 }
0x24c8   :  { %v1862_v13 = vpop.f32.mrf.mxu0 }
0x24d2   :  { %v2027_v15 = vpop.eup %2026 }
0x24d3   :  { %1200 = vrot.lane.b32.xlu1 %v2027_v15, %s2091_s0 }
0x24d4   :  { %v2029_v16 = vpop.eup %2028 }
0x24d5   :  { %v1194_v17 = vadd.f32 1.0, %v2029_v16 }
0x24d7   :  { %2030 = vrcp.f32 %v1194_v17 }
0x24e4   :  { %v2031_v18 = vpop.eup %2030 }
0x24e5   :  { %v1198_v20 = vmul.f32 %v2031_v18, %v2360_v35 }
0x2545   :  { %v1201_v19 = vpop.permute.xlu1 %1200 }
0x2546   :  { %v1203_v8 = vmul.f32 %v2031_v18, %v1201_v19 }
0x2548   :  { %1205 = vrot.lane.b32.xlu0 %v1203_v8, %s2093_s23 }
0x25ba   :  { %v1206_v21 = vpop.permute.xlu0 %1205 }
0x25bb   :  { %v2396_v22 = vadd.f32 %v1206_v21, %v1198_v20 }
0x25bd   :  { %2032 = vtanh.f32 %v2396_v22 }
0x25ca   :  { %v2033_v24 = vpop.eup %2032 }
0x25cb   :  { %1211 = vrot.lane.b32.xlu1 %v2033_v24, %s2094_s24 }
0x263d   :  { %v1212_v25 = vpop.permute.xlu1 %1211 }
0x263e   :  { %v1214_v27 = vmul.f32 %v2031_v18, %v1212_v25 }
0x2640   :  { %v1216_v28 = vpack.c.bf16 %v1214_v27, %v1214_v27 }
0x2642   :  { %1218 = vrot.lane.b32.xlu0 %v1216_v28, %s2092_s18 }
0x26b4   :  { %v1219_v29 = vpop.permute.xlu0 %1218 }
0x26b5   :  { %1866 = vmatmul.mubr.msk.bf16.vlgmr.msra.gmra.mxu1 %vm289_vm2, %v1219_v29 }
0x26b6   :  { %1878 = vmatpush3.bf16.msra.mxu1 %v2173_v40  ;;  %1879 = vmatprep.mubr.msk.bf16.mxu1 %vm2090_vm0, %v2089_v0 }
0x2775   :  { %v1257_v30 = vpop.f32.mrf.mxu1 }
0x2776   :  { %1264 = vrot.lane.b32.xlu1 %v1257_v30, %s2087_s12 }
0x2777   :  { %v1867_v31 = vpop.f32.mrf.mxu1 }
0x2778   :  { %v1922_v31 = vld [vmem:[#allocation2 + $0x70] sm:$0xff]  }
0x2779   :  { %v1260_v32 = vpop.f32.mrf.mxu1 }
0x277a   :  { %v1925_v32 = vld [vmem:[#allocation2 + $0x58] sm:$0xff]  }
0x277b   :  { %v1868_v33 = vpop.f32.mrf.mxu1 }
0x27e8   :  { %v1265_v35 = vpop.permute.xlu1 %1264 }
0x27e9   :  { %v1267_v36 = vadd.f32 %v1265_v35, %v1215_v34  ;;  %v1928_v35 = vld [vmem:[#allocation2 + $0x40] sm:$0xff]  }
0x27eb   :  { %2034 = vtanh.f32 %v1267_v36  ;;  %v1686_v39 = vmul.f32 -1.442695, %v1267_v36  ;;  %v1929_v36 = vld [vmem:[#allocation2 + $0x38] sm:$0xff]  }
0x27ed   :  { %2036 = vpow2.f32 %v1686_v39 }
0x27f8   :  { %v2035_v37 = vpop.eup %2034 }
0x27f9   :  { %1277 = vrot.lane.b32.xlu0 %v2035_v37, %s2091_s0 }
0x27fa   :  { %v2037_v40 = vpop.eup %2036 }
0x27fb   :  { %v1271_v41 = vadd.f32 1.0, %v2037_v40 }
0x27fd   :  { %2038 = vrcp.f32 %v1271_v41 }
0x280a   :  { %v2039_v42 = vpop.eup %2038 }
0x280b   :  { %v1275_v45 = vmul.f32 %v2039_v42, %v2376_v61 }
0x286b   :  { %v1278_v43 = vpop.permute.xlu0 %1277 }
0x286c   :  { %v1280_v44 = vmul.f32 %v2039_v42, %v1278_v43 }
0x286e   :  { %1282 = vrot.lane.b32.xlu1 %v1280_v44, %s2093_s23 }
0x2872   :  { %1293 = vrot.lane.b32.xlu1 %v1214_v27, %s2092_s18 }
0x28e0   :  { %v1283_v46 = vpop.permute.xlu1 %1282 }
0x28e1   :  { %v2411_v47 = vadd.f32 %v1283_v46, %v1275_v45 }
0x28e3   :  { %2040 = vtanh.f32 %v2411_v47 }
0x28e4   :  { %v1294_v52 = vpop.permute.xlu1 %1293 }
0x28f0   :  { %v2041_v48 = vpop.eup %2040 }
0x28f1   :  { %1288 = vrot.lane.b32.xlu0 %v2041_v48, %s2094_s24 }
0x2963   :  { %v1289_v49 = vpop.permute.xlu0 %1288 }
0x2964   :  { %v2415_v50 = vmul.f32 %v2039_v42, %v1289_v49 }
0x2966   :  { %1297 = vrot.lane.b32.xlu0 %v2415_v50, %s2094_s24 }
0x29d8   :  { %v1298_v53 = vpop.permute.xlu0 %1297 }
0x29d9   :  { %v1300_v54 = vsel %vm289_vm2, %v1294_v52, %v1298_v53 }
0x29da   :  { %v1301_v56 = vpack.c.bf16 %v1300_v54, %v1300_v54 }
0x29dc   :  { %1874 = vmatmul.mubr.msk.bf16.vlgmr.msra.gmra.mxu0 %vm78_vm1, %v1301_v56 }
0x29dd   :  { %1899 = vmatprep.mubr.msk.bf16.mxu0 %vm2090_vm0, %v2089_v0  ;;  %1884 = vmatpush3.bf16.msra.mxu0 %v1922_v31  ;;  %vm1635_vm0 = vcmask 80896  }
0x29de   :  { %1885 = vmatprep.subr.bf16.mxu0 %v2089_v0 }
0x2a9c   :  { %v1339_v57 = vpop.f32.mrf.mxu0 }
0x2a9d   :  { %v1345_v58 = vadd.f32 %v1339_v57, %v2165_v23  ;;  %v1370_v20 = vadd.f32 %v1339_v57, %v2189_v51 }
0x2a9e   :  { %v1875_v59 = vpop.f32.mrf.mxu0 }
0x2a9f   :  { %2042 = vtanh.f32 %v1345_v58  ;;  %v1688_v63 = vmul.f32 -1.442695, %v1345_v58 }
0x2aa0   :  { %v1342_v60 = vpop.f32.mrf.mxu0 }
0x2aa1   :  { %2044 = vpow2.f32 %v1688_v63 }
0x2aa2   :  { %v1876_v61 = vpop.f32.mrf.mxu0 }
0x2aac   :  { %v2043_v62 = vpop.eup %2042 }
0x2aad   :  { %1355 = vrot.lane.b32.xlu1 %v2043_v62, %s2091_s0 }
0x2aae   :  { %v2045_v2 = vpop.eup %2044 }
0x2aaf   :  { %v1349_v4 = vadd.f32 1.0, %v2045_v2 }
0x2ab1   :  { %2046 = vrcp.f32 %v1349_v4 }
0x2abe   :  { %v2047_v6 = vpop.eup %2046 }
0x2abf   :  { %v1353_v11 = vmul.f32 %v2047_v6, %v2396_v22 }
0x2b1f   :  { %v1356_v9 = vpop.permute.xlu1 %1355 }
0x2b20   :  { %v1358_v10 = vmul.f32 %v2047_v6, %v1356_v9 }
0x2b22   :  { %1360 = vrot.lane.b32.xlu0 %v1358_v10, %s2093_s23 }
0x2b94   :  { %v1361_v23 = vpop.permute.xlu0 %1360 }
0x2b95   :  { %v1363_v3 = vadd.f32 %v1361_v23, %v1353_v11  ;;  %v1593_v11 = vlaneseq }
0x2b97   :  { %2048 = vtanh.f32 %v1363_v3  ;;  %v1594_v23 = vand.u32 127, %v1593_v11 }
0x2b99   :  { %v1595_v3 = vcvt.s32.f32 %v1594_v23 }
0x2ba4   :  { %v2049_v12 = vpop.eup %2048 }
0x2ba5   :  { %1366 = vrot.lane.b32.xlu1 %v2049_v12, %s2094_s24 }
0x2c17   :  { %v1367_v13 = vpop.permute.xlu1 %1366 }
0x2c18   :  { %v1369_v15 = vmul.f32 %v2047_v6, %v1367_v13 }
0x2c1a   :  { %v1371_v7 = vpack.c.bf16 %v1369_v15, %v1369_v15 }
0x2c1c   :  { %1373 = vrot.lane.b32.xlu0 %v1371_v7, %s2092_s18 }
0x2c8e   :  { %v1374_v16 = vpop.permute.xlu0 %1373 }
0x2c8f   :  { %1880 = vmatmul.mubr.msk.bf16.vlgmr.msra.gmra.mxu1 %vm289_vm2, %v1374_v16 }
0x2d4f   :  { %v1412_v17 = vpop.f32.mrf.mxu1 }
0x2d50   :  { %1419 = vrot.lane.b32.xlu1 %v1412_v17, %s2087_s12 }
0x2d51   :  { %v1881_v18 = vpop.f32.mrf.mxu1 }
0x2d53   :  { %v1415_v19 = vpop.f32.mrf.mxu1 }
0x2d55   :  { %v1882_v8 = vpop.f32.mrf.mxu1 }
0x2dc2   :  { %v1420_v21 = vpop.permute.xlu1 %1419 }
0x2dc3   :  { %v1422_v22 = vadd.f32 %v1420_v21, %v1370_v20  ;;  %v1604_v20 = vshrl.u32 %v1594_v23, 1  ;;  %v1606_v21 = vand.u32 1, %v1594_v23 }
0x2dc5   :  { %2050 = vtanh.f32 %v1422_v22  ;;  %v1690_v25 = vmul.f32 -1.442695, %v1422_v22  ;;  %v1605_v22 = vcvt.s32.f32 %v1604_v20  ;;  %vm1607_vm11 = vcmp.eq.s32.totalorder %v1606_v21, 1 }
0x2dc7   :  { %2052 = vpow2.f32 %v1690_v25 }
0x2dd2   :  { %v2051_v24 = vpop.eup %2050 }
0x2dd3   :  { %1432 = vrot.lane.b32.xlu0 %v2051_v24, %s2091_s0 }
0x2dd4   :  { %v2053_v27 = vpop.eup %2052 }
0x2dd5   :  { %v1426_v28 = vadd.f32 1.0, %v2053_v27 }
0x2dd7   :  { %1447 = vrot.lane.b32.xlu0 %v2200_v5, %s2093_s23  ;;  %2054 = vrcp.f32 %v1426_v28  ;;  %v1923_v5 = vld [vmem:[#allocation2 + $0x68] sm:$0xff]  }
0x2dd8   :  { %1886 = vmatpush3.bf16.msra.mxu0 %v1923_v5 }
0x2dd9   :  { %1887 = vmatprep.subr.bf16.mxu0 %v2089_v0 }
0x2ddb   :  { %1453 = vrot.lane.b32.xlu0 %v2308_v26, %s2087_s12  ;;  %v1924_v26 = vld [vmem:[#allocation2 + $0x60] sm:$0xff]  }
0x2ddc   :  { %1888 = vmatpush3.bf16.msra.mxu0 %v1924_v26 }
0x2ddd   :  { %1889 = vmatprep.subr.bf16.mxu0 %v2089_v0 }
0x2de0   :  { %1890 = vmatpush3.bf16.msra.mxu0 %v1925_v32 }
0x2de1   :  { %1891 = vmatprep.subr.bf16.mxu0 %v2089_v0 }
0x2de4   :  { %v2055_v29 = vpop.eup %2054 }
0x2e45   :  { %v1433_v30 = vpop.permute.xlu0 %1432 }
0x2e46   :  { %v1435_v51 = vmul.f32 %v2055_v29, %v1433_v30 }
0x2e48   :  { %1437 = vrot.lane.b32.xlu1 %v1435_v51, %s2093_s23 }
0x2e49   :  { %v1448_v40 = vpop.permute.xlu0 %1447 }
0x2e4a   :  { %v1465_v43 = vsel %vm289_vm2, %v1448_v40, %v2237_v55  ;;  %v1691_v55 = vld [vmem:[%s2469_s1 + $0x18] ss:$0 sm:$0xff]  ;;  %s2097_s1 = smov 2   ;;  %vm1639_vm2 = vcmask 179200  }
0x2e4c   :  { %1450 = vrot.lane.b32.xlu1 %v2272_v38, %s2095_s27  ;;  %v1926_v38 = vld [vmem:[#allocation2 + $0x50] sm:$0xff]  }
0x2e4d   :  { %1892 = vmatpush3.bf16.msra.mxu0 %v1926_v38  ;;  %v1454_v42 = vpop.permute.xlu0 %1453 }
0x2e4e   :  { %1893 = vmatprep.subr.bf16.mxu0 %v2089_v0 }
0x2e50   :  { %1456 = vrot.lane.b32.xlu1 %v2344_v14, %s2092_s18  ;;  %v1927_v14 = vld [vmem:[#allocation2 + $0x48] sm:$0xff]  }
0x2e51   :  { %1894 = vmatpush3.bf16.msra.mxu0 %v1927_v14 }
0x2e52   :  { %1895 = vmatprep.subr.bf16.mxu0 %v2089_v0 }
0x2e54   :  { %1459 = vrot.lane.b32.xlu1 %v2380_v1, %s2091_s0  ;;  %v1430_v1 = vmul.f32 %v2055_v29, %v2411_v47 }
0x2e55   :  { %1896 = vmatpush3.bf16.msra.mxu0 %v1928_v35 }
0x2e56   :  { %1897 = vmatprep.subr.bf16.mxu0 %v2089_v0 }
0x2e59   :  { %1898 = vmatpush3.bf16.msra.mxu0 %v1929_v36 }
0x2eba   :  { %v1438_v33 = vpop.permute.xlu1 %1437 }
0x2ebb   :  { %v1440_v34 = vadd.f32 %v1438_v33, %v1430_v1 }
0x2ebd   :  { %2056 = vtanh.f32 %v1440_v34 }
0x2ebe   :  { %v1451_v39 = vpop.permute.xlu1 %1450 }
0x2ebf   :  { %v1466_v44 = vsel %vm78_vm1, %v1465_v43, %v1451_v39  ;;  %vm1637_vm1 = vcmask 146432  }
0x2ec0   :  { %v1468_v46 = vsel %vm1467_vm3, %v1466_v44, %v1454_v42 }
0x2ec2   :  { %v1457_v41 = vpop.permute.xlu1 %1456 }
0x2ec3   :  { %v1470_v47 = vsel %vm1469_vm4, %v1468_v46, %v1457_v41 }
0x2ec6   :  { %v1460_v45 = vpop.permute.xlu1 %1459 }
0x2ec7   :  { %v1472_v48 = vsel %vm1471_vm5, %v1470_v47, %v1460_v45 }
0x2eca   :  { %v2057_v37 = vpop.eup %2056 }
0x2ecb   :  { %1443 = vrot.lane.b32.xlu0 %v2057_v37, %s2094_s24 }
0x2ecf   :  { %1462 = vrot.lane.b32.xlu0 %v2415_v50, %s2096_s28 }
0x2f3d   :  { %v1444_v0 = vpop.permute.xlu0 %1443 }
0x2f3e   :  { %v1446_v49 = vmul.f32 %v2055_v29, %v1444_v0 }
0x2f41   :  { %v1463_v50 = vpop.permute.xlu0 %1462 }
0x2f42   :  { %v1474_v52 = vsel %vm1473_vm6, %v1472_v48, %v1463_v50 }
0x2f43   :  { %v1476_v53 = vsel %vm1475_vm7, %v1474_v52, %v1446_v49 }
0x2f44   :  { %v1477_v54 = vpack.c.bf16 %v1476_v53, %v1476_v53 }
0x2f46   :  { %1900 = vmatmul.mubr.bf16.vlgmr.msra.gmra.mxu0 %v1477_v54 }
0x3006   :  { %v1564_v56 = vpop.f32.mrf.mxu0 }
0x3007   :  { %v1565_v57 = vadd.f32 %v1691_v55, %v1564_v56 }
0x3008   :  { %v1901_v58 = vpop.f32.mrf.mxu0 }
0x3009   :  { %v1573_v59 = vsel %vm1572_vm8, %v1565_v57, -inf  ;;  %v1570_v10 = vmul.f32 1.442695, %v1565_v57 }
0x300a   :  { %1574 = vmax.xlane.f32.xlu1 %v1573_v59  ;;  %v1567_v60 = vpop.f32.mrf.mxu0 }
0x300c   :  { %v1902_v61 = vpop.f32.mrf.mxu0 }
0x3093   :  { %v1575_v62 = vpop.xlane.xlu1 %1574 }
0x3094   :  { %v1576_v63 = vsub.f32 %v1565_v57, %v1575_v62 }
0x3096   :  { %v1577_v2 = vmul.f32 1.442695, %v1576_v63 }
0x3098   :  { %2058 = vpow2.f32 %v1577_v2 }
0x3099   :  { %2060 = vpow2.f32 %v1570_v10 }
0x30a5   :  { %v2059_v4 = vpop.eup %2058 }
0x30a6   :  { %1580 = vrot.lane.b32.xlu0 %v2059_v4, %s2096_s28  ;;  %v2061_v12 = vpop.eup %2060 }
0x3118   :  { %v1581_v6 = vpop.permute.xlu0 %1580 }
0x3119   :  { %v1584_v9 = vsel %vm1583_vm9, %v1581_v6, 0.0 }
0x311a   :  { %1585 = vadd.xlane.f32.xlu0 %v1584_v9 }
0x3130   :  { %1597 = vrot.lane.b32.xlu0 %v1595_v3, %s2093_s23 }
0x3134   :  { %1626 = vrot.lane.b32.xlu0 %v2061_v12, %s2097_s1 }
0x31a3   :  { %v1586_v13 = vpop.xlane.xlu0 %1585 }
0x31a4   :  { %2062 = vrcp.f32 %v1586_v13 }
0x31a7   :  { %v1598_v18 = vpop.permute.xlu0 %1597 }
0x31ab   :  { %v1627_v5 = vpop.permute.xlu0 %1626 }
0x31b1   :  { %v2063_v15 = vpop.eup %2062 }
0x31b2   :  { %v1588_v7 = vmul.f32 %v2063_v15, %v2059_v4 }
0x31b4   :  { %1630 = vrot.lane.b32.xlu0 %v1588_v7, %s2097_s1  ;;  %v1589_v16 = vsel %vm1572_vm8, %v1588_v7, -inf }
0x31b5   :  { %1590 = vmax.xlane.f32.xlu1 %v1589_v16 }
0x3226   :  { %v1631_v14 = vpop.permute.xlu0 %1630 }
0x323e   :  { %v1591_v17 = vpop.xlane.xlu1 %1590 }
0x323f   :  { %vm1592_vm10 = vcmp.ge.f32.partialorder %v1588_v7, %v1591_v17 }
0x3240   :  { %v1600_v19 = vsel %vm1592_vm10, %v1598_v18, 4.0 }
0x3241   :  { %v1601_v8 = vsel %vm1572_vm8, %v1600_v19, inf }
0x3242   :  { %1602 = vmin.xlane.f32.xlu1 %v1601_v8 }
0x32cb   :  { %v1603_v24 = vpop.xlane.xlu1 %1602 }
0x32cc   :  { %vm1608_vm12 = vcmp.eq.f32.partialorder %v1605_v22, %v1603_v24 }
0x32cd   :  { %v1609_v25 = vsel %vm1608_vm12, %v1565_v57, 0.0 }
0x32ce   :  { %v1610_v27 = vsel %vm1607_vm11, 0.0, %v1609_v25  ;;  %v1615_v29 = vsel %vm1607_vm11, %v1609_v25, 0.0 }
0x32cf   :  { %v1612_v28 = vsel %vm1611_vm13, %v1610_v27, 0.0  ;;  %v1616_v30 = vsel %vm1611_vm13, %v1615_v29, 0.0 }
0x32d0   :  { %1613 = vadd.xlane.f32.xlu1 %v1612_v28 }
0x32d4   :  { %1617 = vadd.xlane.f32.xlu1 %v1616_v30 }
0x32e5   :  { %1622 = vrot.lane.b32.xlu1 %v1565_v57, %s2097_s1 }
0x3359   :  { %v1614_v51 = vpop.xlane.xlu1 %1613 }
0x335d   :  { %v1618_v31 = vpop.xlane.xlu1 %1617 }
0x335e   :  { %v1620_v26 = vsel %vm1619_vm14, %v1614_v51, %v1618_v31 }
0x3361   :  { %v1623_v32 = vpop.permute.xlu1 %1622 }
0x3362   :  { %v1634_v38 = vsel %vm1633_vm15, %v1620_v26, %v1623_v32 }
0x3363   :  { %v1636_v1 = vsel %vm1635_vm0, %v1634_v38, %v1627_v5 }
0x3364   :  { %v1638_v33 = vsel %vm1637_vm1, %v1636_v1, %v1631_v14 }
0x3365   :  { %v1640_v34 = vsel %vm1639_vm2, %v1638_v33, 0.0 }
0x3366   :  { %1641 = vst [vmem:[%s2470_s2] sm:$0x3] %v1640_v34 }
0x3367   :  { %1646 = vsyncpa [#allocation3], 1 }

</bundles_post_ra>
